<compile_context>
chip_gen: v7x
topology: tpu7x:2x2x1
jax: 0.10.0
libtpu: 0.0.40
codegen_flags: <defaults>
</compile_context>

<pallas_src>
import jax
import jax.numpy as jnp
from jax.experimental import pallas as pl
from jax.experimental.pallas import tpu as pltpu

_HIDDEN = 512   # fc1 output width, fixed by the module
_LANE = 128     # TPU lane width


def _round_up(x, m):
    return ((x + m - 1) // m) * m


def _vmem_capacity_bytes():
    """Physical per-core VMEM; conservative (v7x) fallback if unqueryable."""
    try:
        info = pltpu.get_tpu_info()
        cap = getattr(info, "vmem_capacity_bytes", None)
        if cap:
            return int(cap)
    except Exception:
        pass
    return 64 * 1024 * 1024


def _vmem_bytes(tile_b, in_f, hidden, out_pad):
    """Conservative VMEM footprint of one grid step.

    Activations/outputs are double-buffered by the pipeline; weights are
    counted double-buffered too (the Buffered(1) request may be ignored)."""
    feat = 2 * tile_b * in_f * 4                           # f32 input, 2 buffers
    out = 2 * tile_b * out_pad * 2                         # bf16 output, 2 buffers
    weights = 2 * (in_f * hidden + hidden * out_pad) * 2   # bf16 weights, worst case 2x
    biases = 2 * (hidden + out_pad) * 4                    # f32 biases, worst case 2x
    interm = tile_b * (in_f * 2 + hidden * 6 + out_pad * 4)  # bf16 x, f32+bf16 h, f32 out
    return feat + out + weights + biases + interm


def _choose_tile_b(batch, in_f, out_pad, budget, tile_cap):
    """Largest multiple-of-128 batch tile <= tile_cap that fits the budget."""
    tile_b = min(tile_cap, _round_up(batch, _LANE))
    while tile_b > _LANE and _vmem_bytes(tile_b, in_f, _HIDDEN, out_pad) > budget:
        tile_b -= _LANE
    # v7x has 2 TensorCores: guarantee >= 2 grid steps whenever the batch can
    # be split, so the "parallel" batch axis actually feeds both cores.
    if batch > _LANE and pl.cdiv(batch, tile_b) < 2:
        tile_b = max(_LANE, _round_up(pl.cdiv(batch, 2), _LANE))
    return max(tile_b, _LANE)


def _discriminator_kernel(x_ref, w1_ref, b1_ref, w2_ref, b2_ref, o_ref):
    # GRL forward == identity; current_iter only scales the backward pass.
    x = x_ref[...].astype(jnp.bfloat16)            # VPU downcast, hidden under DMA
    # fc1: bf16 MXU inputs, f32 accumulation; bias add + ReLU in f32 (v5e-safe).
    h = jnp.dot(x, w1_ref[...], preferred_element_type=jnp.float32)
    h = jnp.maximum(h + b1_ref[...], 0.0)
    # TODO(synk): Dropout(0.5) is identity in eval mode; training-mode dropout
    # (pltpu.prng_random_bits masking + 2x scaling) intentionally not applied.
    h = h.astype(jnp.bfloat16)                     # bf16 for the second MXU pass
    out = jnp.dot(h, w2_ref[...], preferred_element_type=jnp.float32) + b2_ref[...]
    o_ref[...] = out.astype(o_ref.dtype)           # lane-dense [tile_b, out_pad] store


def discriminator_forward(feature, w1, b1, w2, b2, current_iter=0,
                          out_dtype=jnp.bfloat16, trim_classes=True):
    """feature: [B, in_features]; w1: [in, 512]; b1: [1, 512];
    w2: [512, num_classes]; b2: [1, num_classes].
    Returns [B, num_classes] logits in `out_dtype` (bf16 by default to halve
    the HBM writeback; pass jnp.float32 for f32 logits).
    `current_iter` only affects the GRL backward coefficient — forward ignores it.
    Set trim_classes=False if the consumer tolerates the 128-padded class dim
    (avoids an extra XLA slice/copy)."""
    del current_iter  # GRL forward is identity.
    B, in_f = feature.shape
    num_classes = w2.shape[1]
    out_pad = _round_up(num_classes, _LANE)       # lane-dense output width

    # Generation-aware VMEM budget / tile cap.
    vmem_cap = _vmem_capacity_bytes()
    if vmem_cap >= 96 * 1024 * 1024:              # v5e / v6e: 128 MiB VMEM
        tile_cap = 2048
        budget = min(int(0.75 * vmem_cap), 96 * 1024 * 1024)
    else:                                          # v7x: 64 MiB per TC (or unknown)
        tile_cap = 512
        budget = min(int(0.75 * vmem_cap), 48 * 1024 * 1024)
    tile_b = _choose_tile_b(B, in_f, out_pad, budget, tile_cap)
    grid = (pl.cdiv(B, tile_b),)

    # Pad output columns to a lane multiple (tiny, weights only).
    w2p, b2p = w2, b2
    if out_pad != num_classes:
        w2p = jnp.pad(w2, ((0, 0), (0, out_pad - num_classes)))
        b2p = jnp.pad(b2, ((0, 0), (0, out_pad - num_classes)))

    # bf16 MXU weights (one-time cast of small, reused params); f32 biases.
    w1_bf = w1.astype(jnp.bfloat16)
    w2_bf = w2p.astype(jnp.bfloat16)
    b1_f = b1.astype(jnp.float32)
    b2_f = b2p.astype(jnp.float32)

    est = _vmem_bytes(tile_b, in_f, _HIDDEN, out_pad)
    vmem_limit = int(min(int(0.75 * vmem_cap), max(32 * 1024 * 1024, int(1.5 * est))))
    out_itemsize = jnp.dtype(out_dtype).itemsize
    flops = 2 * B * (in_f * _HIDDEN + _HIDDEN * out_pad)
    bytes_accessed = (B * in_f * feature.dtype.itemsize
                      + (w1_bf.size + w2_bf.size) * 2
                      + (b1_f.size + b2_f.size) * 4
                      + B * out_pad * out_itemsize)

    def _call(single_buffer_weights):
        res_kwargs = {}
        if single_buffer_weights and hasattr(pl, "Buffered"):
            # Constant index_map -> fetched once; single buffer saves VMEM.
            res_kwargs["pipeline_mode"] = pl.Buffered(1)
        in_specs = [
            pl.BlockSpec((tile_b, in_f), lambda i: (i, 0)),               # streamed activations
            pl.BlockSpec((in_f, _HIDDEN), lambda i: (0, 0), **res_kwargs),  # w1: resident
            pl.BlockSpec((1, _HIDDEN), lambda i: (0, 0), **res_kwargs),     # b1: resident
            pl.BlockSpec((_HIDDEN, out_pad), lambda i: (0, 0), **res_kwargs),  # w2: resident
            pl.BlockSpec((1, out_pad), lambda i: (0, 0), **res_kwargs),     # b2: resident
        ]
        return pl.pallas_call(
            _discriminator_kernel,
            out_shape=jax.ShapeDtypeStruct((B, out_pad), out_dtype),
            grid=grid,
            in_specs=in_specs,
            out_specs=pl.BlockSpec((tile_b, out_pad), lambda i: (i, 0)),
            compiler_params=pltpu.CompilerParams(
                dimension_semantics=("parallel",),
                vmem_limit_bytes=vmem_limit,
            ),
            cost_estimate=pl.CostEstimate(
                flops=flops, transcendentals=0, bytes_accessed=bytes_accessed),
        )(feature, w1_bf, b1_f, w2_bf, b2_f)

    try:
        out_padded = _call(True)
    except Exception:
        # Installed Pallas doesn't accept Buffered(1) on pallas_call specs:
        # fall back to default double-buffered residents (correctness identical).
        out_padded = _call(False)

    if trim_classes and out_pad != num_classes:
        return out_padded[:, :num_classes]
    return out_padded


def init_discriminator_params(key, num_classes, in_features, dtype=jnp.float32):
    """Deterministic init matching the PyTorch __init__ (shapes + distributions).
    PyTorch stores Linear weight as (out, in); we store the transpose (in, out)."""
    k1, k2 = jax.random.split(key)
    w1 = (0.01 * jax.random.normal(k1, (in_features, _HIDDEN))).astype(dtype)
    b1 = jnp.zeros((1, _HIDDEN), dtype=dtype)
    w2 = (0.3 * jax.random.normal(k2, (_HIDDEN, num_classes))).astype(dtype)
    b2 = jnp.zeros((1, num_classes), dtype=dtype)
    return w1, b1, w2, b2


def reference_forward_f32(feature, w1, b1, w2, b2):
    h = jnp.maximum(feature @ w1 + b1, 0.0)
    return h @ w2 + b2


def reference_forward_bf16(feature, w1, b1, w2, b2, out_dtype=jnp.bfloat16):
    """Reference mimicking the kernel's bf16-MXU / f32-accumulate numerics."""
    h = jnp.dot(feature.astype(jnp.bfloat16), w1.astype(jnp.bfloat16),
                preferred_element_type=jnp.float32) + b1.astype(jnp.float32)
    h = jnp.maximum(h, 0.0)
    out = jnp.dot(h.astype(jnp.bfloat16), w2.astype(jnp.bfloat16),
                  preferred_element_type=jnp.float32) + b2.astype(jnp.float32)
    return out.astype(out_dtype)


if __name__ == "__main__":
    key = jax.random.PRNGKey(0)
    k_feat, k_params = jax.random.split(key)

    batch = 8
    in_features = 32      # small, consistent with Linear(in_features, 512)
    num_classes = 2

    feature = jax.random.normal(k_feat, (batch, in_features), dtype=jnp.float32)
    w1, b1, w2, b2 = init_discriminator_params(k_params, num_classes, in_features)

    # current_iter only affects the GRL backward coefficient; forward ignores it.
    out = discriminator_forward(feature, w1, b1, w2, b2, current_iter=100)
    out = jax.block_until_ready(out)

    assert out.shape == (batch, num_classes)

    out_f32 = out.astype(jnp.float32)
    ref_bf16 = reference_forward_bf16(feature, w1, b1, w2, b2).astype(jnp.float32)
    ref_f32 = reference_forward_f32(feature, w1, b1, w2, b2)
    assert jnp.allclose(out_f32, ref_bf16, atol=2e-2, rtol=2e-2)
    assert jnp.allclose(out_f32, ref_f32, atol=5e-2, rtol=5e-2)

    print("KERNEL_OK")
</pallas_src>

<mosaic_0001>
module attributes {stable_mosaic.version = 11 : i64} {
  func.func @_discriminator_kernel(%arg0: i32, %arg1: memref<128x32xf32, #tpu.memory_space<vmem>>, %arg2: memref<32x512xbf16, #tpu.memory_space<vmem>>, %arg3: memref<1x512xf32, #tpu.memory_space<vmem>>, %arg4: memref<512x128xbf16, #tpu.memory_space<vmem>>, %arg5: memref<1x128xf32, #tpu.memory_space<vmem>>, %arg6: memref<128x128xbf16, #tpu.memory_space<vmem>>) attributes {dimension_semantics = [#tpu.dimension_semantics<parallel>], iteration_bounds = array<i64: 1>, scalar_prefetch = 0 : i64, scratch_operands = 0 : i64, tpu.core_type = #tpu.core_type<tc>, window_params = [{transform_indices = @transform_0, window_bounds = array<i64: 128, 32>}, {pipeline_mode = #tpu.pipeline_mode<synchronous>, transform_indices = @transform_1, window_bounds = array<i64: 32, 512>}, {pipeline_mode = #tpu.pipeline_mode<synchronous>, transform_indices = @transform_2, window_bounds = array<i64: 1, 512>}, {pipeline_mode = #tpu.pipeline_mode<synchronous>, transform_indices = @transform_3, window_bounds = array<i64: 512, 128>}, {pipeline_mode = #tpu.pipeline_mode<synchronous>, transform_indices = @transform_4, window_bounds = array<i64: 1, 128>}, {transform_indices = @transform_5, window_bounds = array<i64: 128, 128>}]} {
    %c0 = arith.constant 0 : index
    %c0_0 = arith.constant 0 : index
    %0 = vector.load %arg1[%c0, %c0_0] : memref<128x32xf32, #tpu.memory_space<vmem>>, vector<128x32xf32>
    %1 = arith.truncf %0 : vector<128x32xf32> to vector<128x32xbf16>
    %c0_1 = arith.constant 0 : index
    %c0_2 = arith.constant 0 : index
    %2 = vector.load %arg2[%c0_1, %c0_2] : memref<32x512xbf16, #tpu.memory_space<vmem>>, vector<32x512xbf16>
    %cst = arith.constant dense<0.000000e+00> : vector<128x512xf32>
    %3 = tpu.matmul %1, %2, %cst {dimension_numbers = #tpu.dot_dimension_numbers<[1], [0], [0], [1], [0, 0, 1, 1], [], []>} : vector<128x32xbf16>, vector<32x512xbf16>, vector<128x512xf32> -> vector<128x512xf32>
    %c0_3 = arith.constant 0 : index
    %c0_4 = arith.constant 0 : index
    %4 = vector.load %arg3[%c0_3, %c0_4] : memref<1x512xf32, #tpu.memory_space<vmem>>, vector<1x512xf32>
    %5 = vector.broadcast %4 : vector<1x512xf32> to vector<128x512xf32>
    %6 = arith.addf %3, %5 : vector<128x512xf32>
    %cst_5 = arith.constant 0.000000e+00 : f32
    %7 = vector.broadcast %cst_5 : f32 to vector<128x512xf32>
    %8 = arith.maximumf %6, %7 : vector<128x512xf32>
    %9 = arith.truncf %8 : vector<128x512xf32> to vector<128x512xbf16>
    %c0_6 = arith.constant 0 : index
    %c0_7 = arith.constant 0 : index
    %10 = vector.load %arg4[%c0_6, %c0_7] : memref<512x128xbf16, #tpu.memory_space<vmem>>, vector<512x128xbf16>
    %cst_8 = arith.constant dense<0.000000e+00> : vector<128x128xf32>
    %11 = tpu.matmul %9, %10, %cst_8 {dimension_numbers = #tpu.dot_dimension_numbers<[1], [0], [0], [1], [0, 0, 1, 1], [], []>} : vector<128x512xbf16>, vector<512x128xbf16>, vector<128x128xf32> -> vector<128x128xf32>
    %c0_9 = arith.constant 0 : index
    %c0_10 = arith.constant 0 : index
    %12 = vector.load %arg5[%c0_9, %c0_10] : memref<1x128xf32, #tpu.memory_space<vmem>>, vector<1x128xf32>
    %13 = vector.broadcast %12 : vector<1x128xf32> to vector<128x128xf32>
    %14 = arith.addf %11, %13 : vector<128x128xf32>
    %15 = arith.truncf %14 : vector<128x128xf32> to vector<128x128xbf16>
    %c0_11 = arith.constant 0 : index
    %c0_12 = arith.constant 0 : index
    %16 = vector.load %arg6[%c0_11, %c0_12] : memref<128x128xbf16, #tpu.memory_space<vmem>>, vector<128x128xbf16>
    tpu.vector_store %arg6[%c0_11, %c0_12], %15 {strides = array<i32>} : memref<128x128xbf16, #tpu.memory_space<vmem>>, vector<128x128xbf16>,
    return
  }
  func.func @transform_0(%arg0: i32) -> (i32, i32) {
    %c0_i32 = arith.constant 0 : i32
    %c0_i32_0 = arith.constant 0 : i32
    return %arg0, %c0_i32 : i32, i32
  }
  func.func @transform_1(%arg0: i32) -> (i32, i32) {
    %c0_i32 = arith.constant 0 : i32
    %c0_i32_0 = arith.constant 0 : i32
    %c0_i32_1 = arith.constant 0 : i32
    return %c0_i32, %c0_i32_0 : i32, i32
  }
  func.func @transform_2(%arg0: i32) -> (i32, i32) {
    %c0_i32 = arith.constant 0 : i32
    %c0_i32_0 = arith.constant 0 : i32
    %c0_i32_1 = arith.constant 0 : i32
    return %c0_i32, %c0_i32_0 : i32, i32
  }
  func.func @transform_3(%arg0: i32) -> (i32, i32) {
    %c0_i32 = arith.constant 0 : i32
    %c0_i32_0 = arith.constant 0 : i32
    %c0_i32_1 = arith.constant 0 : i32
    return %c0_i32, %c0_i32_0 : i32, i32
  }
  func.func @transform_4(%arg0: i32) -> (i32, i32) {
    %c0_i32 = arith.constant 0 : i32
    %c0_i32_0 = arith.constant 0 : i32
    %c0_i32_1 = arith.constant 0 : i32
    return %c0_i32, %c0_i32_0 : i32, i32
  }
  func.func @transform_5(%arg0: i32) -> (i32, i32) {
    %c0_i32 = arith.constant 0 : i32
    %c0_i32_0 = arith.constant 0 : i32
    return %arg0, %c0_i32 : i32, i32
  }
}

module attributes {stable_mosaic.version = 11 : i64} {
  func.func @_discriminator_kernel(%arg0: i32, %arg1: memref<128x32xf32, #tpu.memory_space<vmem>>, %arg2: memref<32x512xbf16, #tpu.memory_space<vmem>>, %arg3: memref<1x512xf32, #tpu.memory_space<vmem>>, %arg4: memref<512x128xbf16, #tpu.memory_space<vmem>>, %arg5: memref<1x128xf32, #tpu.memory_space<vmem>>, %arg6: memref<128x128xbf16, #tpu.memory_space<vmem>>) attributes {dimension_semantics = [#tpu.dimension_semantics<parallel>], iteration_bounds = array<i64: 1>, scalar_prefetch = 0 : i64, scratch_operands = 0 : i64, tpu.core_type = #tpu.core_type<tc>, window_params = [{transform_indices = @transform_0, window_bounds = array<i64: 128, 32>}, {pipeline_mode = #tpu.pipeline_mode<synchronous>, transform_indices = @transform_1, window_bounds = array<i64: 32, 512>}, {pipeline_mode = #tpu.pipeline_mode<synchronous>, transform_indices = @transform_2, window_bounds = array<i64: 1, 512>}, {pipeline_mode = #tpu.pipeline_mode<synchronous>, transform_indices = @transform_3, window_bounds = array<i64: 512, 128>}, {pipeline_mode = #tpu.pipeline_mode<synchronous>, transform_indices = @transform_4, window_bounds = array<i64: 1, 128>}, {transform_indices = @transform_5, window_bounds = array<i64: 128, 128>}]} {
    %c0 = arith.constant 0 : index
    %c0_0 = arith.constant 0 : index
    %0 = vector.load %arg1[%c0, %c0_0] : memref<128x32xf32, #tpu.memory_space<vmem>>, vector<128x32xf32>
    %1 = arith.truncf %0 : vector<128x32xf32> to vector<128x32xbf16>
    %c0_1 = arith.constant 0 : index
    %c0_2 = arith.constant 0 : index
    %2 = vector.load %arg2[%c0_1, %c0_2] : memref<32x512xbf16, #tpu.memory_space<vmem>>, vector<32x512xbf16>
    %cst = arith.constant dense<0.000000e+00> : vector<128x512xf32>
    %3 = tpu.matmul %1, %2, %cst {dimension_numbers = #tpu.dot_dimension_numbers<[1], [0], [0], [1], [0, 0, 1, 1], [], []>} : vector<128x32xbf16>, vector<32x512xbf16>, vector<128x512xf32> -> vector<128x512xf32>
    %c0_3 = arith.constant 0 : index
    %c0_4 = arith.constant 0 : index
    %4 = vector.load %arg3[%c0_3, %c0_4] : memref<1x512xf32, #tpu.memory_space<vmem>>, vector<1x512xf32>
    %5 = vector.broadcast %4 : vector<1x512xf32> to vector<128x512xf32>
    %6 = arith.addf %3, %5 : vector<128x512xf32>
    %cst_5 = arith.constant 0.000000e+00 : f32
    %7 = vector.broadcast %cst_5 : f32 to vector<128x512xf32>
    %8 = arith.maximumf %6, %7 : vector<128x512xf32>
    %9 = arith.truncf %8 : vector<128x512xf32> to vector<128x512xbf16>
    %c0_6 = arith.constant 0 : index
    %c0_7 = arith.constant 0 : index
    %10 = vector.load %arg4[%c0_6, %c0_7] : memref<512x128xbf16, #tpu.memory_space<vmem>>, vector<512x128xbf16>
    %cst_8 = arith.constant dense<0.000000e+00> : vector<128x128xf32>
    %11 = tpu.matmul %9, %10, %cst_8 {dimension_numbers = #tpu.dot_dimension_numbers<[1], [0], [0], [1], [0, 0, 1, 1], [], []>} : vector<128x512xbf16>, vector<512x128xbf16>, vector<128x128xf32> -> vector<128x128xf32>
    %c0_9 = arith.constant 0 : index
    %c0_10 = arith.constant 0 : index
    %12 = vector.load %arg5[%c0_9, %c0_10] : memref<1x128xf32, #tpu.memory_space<vmem>>, vector<1x128xf32>
    %13 = vector.broadcast %12 : vector<1x128xf32> to vector<128x128xf32>
    %14 = arith.addf %11, %13 : vector<128x128xf32>
    %15 = arith.truncf %14 : vector<128x128xf32> to vector<128x128xbf16>
    %c0_11 = arith.constant 0 : index
    %c0_12 = arith.constant 0 : index
    %16 = vector.load %arg6[%c0_11, %c0_12] : memref<128x128xbf16, #tpu.memory_space<vmem>>, vector<128x128xbf16>
    tpu.vector_store %arg6[%c0_11, %c0_12], %15 {strides = array<i32>} : memref<128x128xbf16, #tpu.memory_space<vmem>>, vector<128x128xbf16>,
    return
  }
  func.func @transform_0(%arg0: i32) -> (i32, i32) {
    %c0_i32 = arith.constant 0 : i32
    %c0_i32_0 = arith.constant 0 : i32
    return %arg0, %c0_i32 : i32, i32
  }
  func.func @transform_1(%arg0: i32) -> (i32, i32) {
    %c0_i32 = arith.constant 0 : i32
    %c0_i32_0 = arith.constant 0 : i32
    %c0_i32_1 = arith.constant 0 : i32
    return %c0_i32, %c0_i32_0 : i32, i32
  }
  func.func @transform_2(%arg0: i32) -> (i32, i32) {
    %c0_i32 = arith.constant 0 : i32
    %c0_i32_0 = arith.constant 0 : i32
    %c0_i32_1 = arith.constant 0 : i32
    return %c0_i32, %c0_i32_0 : i32, i32
  }
  func.func @transform_3(%arg0: i32) -> (i32, i32) {
    %c0_i32 = arith.constant 0 : i32
    %c0_i32_0 = arith.constant 0 : i32
    %c0_i32_1 = arith.constant 0 : i32
    return %c0_i32, %c0_i32_0 : i32, i32
  }
  func.func @transform_4(%arg0: i32) -> (i32, i32) {
    %c0_i32 = arith.constant 0 : i32
    %c0_i32_0 = arith.constant 0 : i32
    %c0_i32_1 = arith.constant 0 : i32
    return %c0_i32, %c0_i32_0 : i32, i32
  }
  func.func @transform_5(%arg0: i32) -> (i32, i32) {
    %c0_i32 = arith.constant 0 : i32
    %c0_i32_0 = arith.constant 0 : i32
    return %arg0, %c0_i32 : i32, i32
  }
}

</mosaic_0001>

<bundles_post_ra>
// kernel: tpu_custom_call.1
= control target key start
LH: loop header
LB: loop body
LE: loop exit
PB: predicated region body
PF: predicated region fallthrough
CT: control target
= control target key end

     0   :  { %10 = vsyncpa [#allocation3], 0  ;;  %s1695_s0 = inlined_call_operand.hbm [shape: f32[8,32], index: 0, kind: input, shape index: {}]   ;;  %s1696_s1 = inlined_call_operand.hbm [shape: bf16[32,512], index: 1, kind: input, shape index: {}]   ;;  %s1697_s2 = inlined_call_operand.vmem [shape: f32[1,512], index: 2, kind: input, shape index: {}]   ;;  %s1698_s3 = inlined_call_operand.hbm [shape: bf16[512,128], index: 3, kind: input, shape index: {}]   ;;  %s1699_s4 = inlined_call_operand.vmem [shape: f32[1,128], index: 4, kind: input, shape index: {}]   ;;  %s1700_s5 = inlined_call_operand.hbm [shape: bf16[8,128], index: 5, kind: output, shape index: {}]  }
   0x1   :  { %11 = vsyncpa [#allocation6], 0 }
   0x2   :  { %12 = vsyncpa [#allocation4], 0 }
   0x3   :  { %17 = vsyncadd [#allocation3], 1920  ;;  %s1472_s18 = smov [#allocation5]   ;;  %s1378_s22 = scalar_lea.hbm %s1696_s1, 1024 }
   0x4   :  { %s30_s19 = sshll.u32 %s1472_s18, 4  ;;  %p1379_p0 = scmp.ne.s32.totalorder %s1696_s1, %s1378_s22  ;;  %s31_s19 = int_to_ptr.vmem [resolvable:$true] %s30_s19 }
   0x5   :  { %p1382_p1 = scmp.lt.u32.totalorder %s1378_s22, %s1696_s1 }
   0x7   :  { %p1384_p2 = pnand %p1382_p1, %p1379_p0 }
   0x9   :  { %1387 = shalt.err (!%p1384_p2)
}
   0xa   :  { %s1388_s27 = scalar_lea.vmem %s31_s19, 1024  ;;  %p1393_p4 = scmp.lt.s32.totalorder %s31_s19, %s31_s19 }
   0xb   :  { %p1389_p3 = scmp.ne.s32.totalorder %s31_s19, %s1388_s27  ;;  %p1394_p5 = scmp.lt.s32.totalorder %s1388_s27, %s1388_s27 }
   0xd   :  { %p1395_p6 = por %p1394_p5, %p1393_p4 }
   0xf   :  { %p1396_p7 = pnand %p1395_p6, %p1389_p3 }
  0x11   :  { %1399 = shalt.err (!%p1396_p7)
}
  0x12   :  { %s1473_s28 = smov 256   ;;  %s1474_s29 = smov 16  }
  0x13   :  { %36 = dma.hbm_to_vmem [thread:$0]  %s1696_s1, 1024, %s31_s19, [#allocation6], %s1473_s28, %s1473_s28, %s1474_s29  }
  0x14   :  { %s1475_s7 = smov [#allocation2]   ;;  %s1400_s11 = scalar_lea.hbm %s1695_s0, 128 }
  0x15   :  { %s18_s8 = sshll.u32 %s1475_s7, 4  ;;  %p1401_p8 = scmp.ne.s32.totalorder %s1695_s0, %s1400_s11  ;;  %s19_s8 = int_to_ptr.vmem [resolvable:$true] %s18_s8 }
  0x16   :  { %p1404_p9 = scmp.lt.u32.totalorder %s1400_s11, %s1695_s0 }
  0x18   :  { %p1406_p10 = pnand %p1404_p9, %p1401_p8 }
  0x1a   :  { %1409 = shalt.err (!%p1406_p10)
}
  0x1b   :  { %s1410_s16 = scalar_lea.vmem %s19_s8, 128  ;;  %s1414_s1 = scalar_lea.vmem %s19_s8, 2048 }
  0x1c   :  { %p1411_p11 = scmp.ne.s32.totalorder %s19_s8, %s1410_s16  ;;  %p1415_p12 = scmp.lt.s32.totalorder %s19_s8, %s19_s8 }
  0x1d   :  { %p1416_p13 = scmp.lt.s32.totalorder %s1414_s1, %s1410_s16 }
  0x1f   :  { %p1417_p0 = por %p1416_p13, %p1415_p12 }
  0x21   :  { %p1418_p1 = pnand %p1417_p0, %p1411_p11 }
  0x23   :  { %1421 = shalt.err (!%p1418_p1)
}
  0x24   :  { %s1476_s17 = smov 128   ;;  %s1477_s18 = smov 8  }
  0x25   :  { %24 = dma.hbm_to_vmem [thread:$0]  %s1695_s0, 128, %s19_s8, [#allocation3], %s1476_s17, %s1476_s17, %s1477_s18  }
  0x26   :  { %s1478_s21 = smov [#allocation7]   ;;  %s1422_s25 = scalar_lea.hbm %s1698_s3, 4096 }
  0x27   :  { %s44_s22 = sshll.u32 %s1478_s21, 4  ;;  %p1423_p2 = scmp.ne.s32.totalorder %s1698_s3, %s1422_s25  ;;  %s45_s22 = int_to_ptr.vmem [resolvable:$true] %s44_s22 }
  0x28   :  { %p1426_p3 = scmp.lt.u32.totalorder %s1422_s25, %s1698_s3 }
  0x2a   :  { %p1428_p4 = pnand %p1426_p3, %p1423_p2 }
  0x2c   :  { %1431 = shalt.err (!%p1428_p4)
}
  0x2d   :  { %s1432_s30 = scalar_lea.vmem %s45_s22, 4096  ;;  %p1437_p6 = scmp.lt.s32.totalorder %s45_s22, %s45_s22 }
  0x2e   :  { %p1433_p5 = scmp.ne.s32.totalorder %s45_s22, %s1432_s30  ;;  %p1438_p7 = scmp.lt.s32.totalorder %s1432_s30, %s1432_s30 }
  0x30   :  { %p1439_p8 = por %p1438_p7, %p1437_p6 }
  0x32   :  { %p1440_p9 = pnand %p1439_p8, %p1433_p5 }
  0x34   :  { %1443 = shalt.err (!%p1440_p9)
}
  0x35   :  { %s1479_s0 = smov 64   ;;  %s1480_s6 = smov 4  }
  0x36   :  { %50 = dma.hbm_to_vmem [thread:$0]  %s1698_s3, 4096, %s45_s22, [#allocation6], %s1479_s0, %s1479_s0, %s1480_s6  }
  0x37   :  { %1466 = dma.done.wait [#allocation3], 2048  }
  0x38   :  { %1467 = vsyncadd [#allocation3], 4294965248 }
  0x39   :  { %1468 = dma.done.wait [#allocation6], 5120  }
  0x3a   :  { %1469 = vsyncadd [#allocation6], 4294962176  ;;  %v1481_v0 = vmov 0   ;;  %v1334_v1 = vld [vmem:[#allocation5 + $0x4] ss:$16 sps:$4 sm:$0xff]   ;;  %v64_v10 = vld [vmem:[#allocation2 + $0x8] sm:$0xff] }
  0x3b   :  { %214 = vmatprep.mubr.bf16.mxu0 %v1481_v0  ;;  %327 = vmatprep.mubr.bf16.mxu1 %v1481_v0  ;;  %v1336_v2 = vld [vmem:[#allocation5 + $0xc] ss:$16 sps:$4 sm:$0xff]   ;;  %v1338_v3 = vld [vmem:[#allocation5] ss:$16 sps:$4 sm:$0xff]   ;;  %v1339_v4 = vld [vmem:[#allocation5 + $0x8] ss:$16 sps:$4 sm:$0xff]  }
  0x3c   :  { %182 = vmatprep.subr.bf16.mxu0 %v1334_v1  ;;  %295 = vmatprep.subr.bf16.mxu1 %v1336_v2  ;;  %v1340_v5 = vld [vmem:[#allocation5 + $0x24] ss:$16 sps:$4 sm:$0xff]   ;;  %v1342_v6 = vld [vmem:[#allocation5 + $0x2c] ss:$16 sps:$4 sm:$0xff]   ;;  %v1344_v7 = vld [vmem:[#allocation5 + $0x20] ss:$16 sps:$4 sm:$0xff]   ;;  %v97_v2 = vlaneseq }
  0x3d   :  { %183 = vmatpush1.bf16.msra.mxu0 %v1338_v3  ;;  %296 = vmatpush1.bf16.msra.mxu1 %v1339_v4  ;;  %v1345_v8 = vld [vmem:[#allocation5 + $0x28] ss:$16 sps:$4 sm:$0xff]   ;;  %v63_v9 = vld [vmem:[#allocation2] sm:$0xff]  ;;  %vm157_vm0 = vcmask 261120   ;;  %v65_v12 = vld [vmem:[#allocation2 + $0x10] sm:$0xff] }
  0x3e   :  { %184 = vmatprep.subr.bf16.mxu0 %v1340_v5  ;;  %297 = vmatprep.subr.bf16.mxu1 %v1342_v6  ;;  %v79_v11 = vpack.c.bf16 %v64_v10, %v63_v9  ;;  %v66_v13 = vld [vmem:[#allocation2 + $0x18] sm:$0xff]  ;;  %v1346_v14 = vld [vmem:[#allocation7 + $0x40] sm:$0xff]   ;;  %v1350_v19 = vld [vmem:[#allocation7 + $0x48] sm:$0xff]   ;;  %v98_v3 = vshrl.u32 %v97_v2, 7 }
  0x3f   :  { %v1347_v15 = vld [vmem:[#allocation7] sm:$0xff]   ;;  %v80_v18 = vpack.c.bf16 %v66_v13, %v65_v12  ;;  %v1351_v20 = vld [vmem:[#allocation7 + $0x8] sm:$0xff]   ;;  %v1354_v25 = vld [vmem:[#allocation7 + $0x50] sm:$0xff]  }
  0x40   :  { %v1348_v16 = vld [vmem:[#allocation7 + $0xc0] sm:$0xff]   ;;  %v1352_v21 = vld [vmem:[#allocation7 + $0xc8] sm:$0xff]   ;;  %v1355_v26 = vld [vmem:[#allocation7 + $0x10] sm:$0xff]   ;;  %v99_v4 = vsub.s32 0, %v98_v3  ;;  %v107_v5 = vsub.s32 2, %v98_v3  ;;  %v103_v6 = vsub.s32 1, %v98_v3 }
  0x41   :  { %185 = vmatpush1.bf16.msra.mxu0 %v1344_v7  ;;  %298 = vmatpush1.bf16.msra.mxu1 %v1345_v8  ;;  %v1349_v17 = vld [vmem:[#allocation7 + $0x80] sm:$0xff]   ;;  %v68_v23 = vld [vmem:[#allocation2 + $0x28] sm:$0xff]  ;;  %v1356_v27 = vld [vmem:[#allocation7 + $0xd0] sm:$0xff]   ;;  %v111_v7 = vsub.s32 3, %v98_v3 }
  0x42   :  { %1195 = vmatprep.subr.bf16.mxu0 %v1346_v14  ;;  %1259 = vmatprep.subr.bf16.mxu1 %v1348_v16  ;;  %v67_v22 = vld [vmem:[#allocation2 + $0x20] sm:$0xff]  ;;  %v1353_v24 = vld [vmem:[#allocation7 + $0x88] sm:$0xff]   ;;  %v1357_v28 = vld [vmem:[#allocation7 + $0x90] sm:$0xff]  }
  0x43   :  { %v81_v29 = vpack.c.bf16 %v68_v23, %v67_v22  ;;  %v1358_v30 = vld [vmem:[#allocation7 + $0x58] sm:$0xff]   ;;  %v69_v33 = vld [vmem:[#allocation2 + $0x30] sm:$0xff]  ;;  %v1362_v36 = vld [vmem:[#allocation7 + $0x60] sm:$0xff]  }
  0x44   :  { %1067 = vmatmul.mubr.msk.bf16.vlgmr.msra.gmra.mrb[0].mxu0 %vm157_vm0, %v79_v11  ;;  %1075 = vmatmul.mubr.msk.bf16.vlgmr.msra.gmra.mrb[0].mxu1 %vm157_vm0, %v79_v11  ;;  %v1359_v31 = vld [vmem:[#allocation7 + $0x18] sm:$0xff]   ;;  %v1363_v37 = vld [vmem:[#allocation7 + $0x20] sm:$0xff]   ;;  %v1366_v41 = vld [vmem:[#allocation7 + $0x68] sm:$0xff]  }
  0x45   :  { %224 = vmatprep.mubr.bf16.mxu0 %v1481_v0  ;;  %337 = vmatprep.mubr.bf16.mxu1 %v1481_v0  ;;  %v1360_v32 = vld [vmem:[#allocation7 + $0xd8] sm:$0xff]   ;;  %v1364_v38 = vld [vmem:[#allocation7 + $0xe0] sm:$0xff]   ;;  %v1367_v42 = vld [vmem:[#allocation7 + $0x28] sm:$0xff]  }
  0x46   :  { %1196 = vmatpush3.bf16.msra.mxu0 %v1347_v15  ;;  %1260 = vmatpush3.bf16.msra.mxu1 %v1349_v17  ;;  %v70_v34 = vld [vmem:[#allocation2 + $0x38] sm:$0xff]  ;;  %v1365_v39 = vld [vmem:[#allocation7 + $0xa0] sm:$0xff]   ;;  %v1368_v43 = vld [vmem:[#allocation7 + $0xe8] sm:$0xff]  }
  0x47   :  { %1197 = vmatprep.subr.bf16.mxu0 %v1350_v19  ;;  %1261 = vmatprep.subr.bf16.mxu1 %v1352_v21  ;;  %v1361_v35 = vld [vmem:[#allocation7 + $0x98] sm:$0xff]   ;;  %v82_v40 = vpack.c.bf16 %v70_v34, %v69_v33  ;;  %v71_v44 = vld [vmem:[#allocation2 + $0x40] sm:$0xff]  ;;  %v72_v45 = vld [vmem:[#allocation2 + $0x48] sm:$0xff] }
  0x48   :  { %v1369_v46 = vld [vmem:[#allocation7 + $0xa8] sm:$0xff]   ;;  %v1370_v47 = vld [vmem:[#allocation7 + $0x70] sm:$0xff]   ;;  %v83_v51 = vpack.c.bf16 %v72_v45, %v71_v44  ;;  %v74_v53 = vld [vmem:[#allocation2 + $0x58] sm:$0xff] }
  0x49   :  { %v1371_v48 = vld [vmem:[#allocation7 + $0x30] sm:$0xff]   ;;  %v75_v55 = vld [vmem:[#allocation2 + $0x60] sm:$0xff]  ;;  %v76_v56 = vld [vmem:[#allocation2 + $0x68] sm:$0xff] }
  0x4a   :  { %1198 = vmatpush3.bf16.msra.mxu0 %v1351_v20  ;;  %1262 = vmatpush3.bf16.msra.mxu1 %v1353_v24  ;;  %v1372_v49 = vld [vmem:[#allocation7 + $0xf0] sm:$0xff]   ;;  %v85_v57 = vpack.c.bf16 %v76_v56, %v75_v55  ;;  %v78_v59 = vld [vmem:[#allocation2 + $0x78] sm:$0xff] }
  0x4b   :  { %1199 = vmatprep.subr.bf16.mxu0 %v1354_v25  ;;  %1263 = vmatprep.subr.bf16.mxu1 %v1356_v27  ;;  %v1373_v50 = vld [vmem:[#allocation7 + $0xb0] sm:$0xff]   ;;  %v1374_v61 = vld [vmem:[#allocation7 + $0x78] sm:$0xff]  }
  0x4c   :  { %1068 = vmatmul.mubr.msk.bf16.gmra.mrb[4].mxu0 %vm157_vm0, %v80_v18  ;;  %1076 = vmatmul.mubr.msk.bf16.gmra.mrb[4].mxu1 %vm157_vm0, %v80_v18  ;;  %v73_v52 = vld [vmem:[#allocation2 + $0x50] sm:$0xff]  ;;  %v1376_v62 = vld [vmem:[#allocation7 + $0xf8] sm:$0xff]  }
  0x4d   :  { %234 = vmatprep.mubr.bf16.mxu0 %v1481_v0  ;;  %347 = vmatprep.mubr.bf16.mxu1 %v1481_v0  ;;  %v84_v54 = vpack.c.bf16 %v74_v53, %v73_v52  ;;  %v77_v58 = vld [vmem:[#allocation2 + $0x70] sm:$0xff]  ;;  %v1375_v63 = vld [vmem:[#allocation7 + $0x38] sm:$0xff]  }
  0x4e   :  { %1200 = vmatpush3.bf16.msra.mxu0 %v1355_v26  ;;  %1264 = vmatpush3.bf16.msra.mxu1 %v1357_v28  ;;  %v86_v60 = vpack.c.bf16 %v78_v59, %v77_v58  ;;  %v1377_v1 = vld [vmem:[#allocation7 + $0xb8] sm:$0xff]  }
  0x4f   :  { %1201 = vmatprep.subr.bf16.mxu0 %v1358_v30  ;;  %1265 = vmatprep.subr.bf16.mxu1 %v1360_v32 }
  0x52   :  { %1202 = vmatpush3.bf16.msra.mxu0 %v1359_v31  ;;  %1266 = vmatpush3.bf16.msra.mxu1 %v1361_v35 }
  0x53   :  { %1203 = vmatprep.subr.bf16.mxu0 %v1362_v36  ;;  %1267 = vmatprep.subr.bf16.mxu1 %v1364_v38 }
  0x54   :  { %1069 = vmatmul.mubr.msk.bf16.gmra.mrb[8].mxu0 %vm157_vm0, %v81_v29  ;;  %1077 = vmatmul.mubr.msk.bf16.gmra.mrb[8].mxu1 %vm157_vm0, %v81_v29 }
  0x55   :  { %244 = vmatprep.mubr.bf16.mxu0 %v1481_v0  ;;  %357 = vmatprep.mubr.bf16.mxu1 %v1481_v0 }
  0x56   :  { %1204 = vmatpush3.bf16.msra.mxu0 %v1363_v37  ;;  %1268 = vmatpush3.bf16.msra.mxu1 %v1365_v39 }
  0x57   :  { %1205 = vmatprep.subr.bf16.mxu0 %v1366_v41  ;;  %1269 = vmatprep.subr.bf16.mxu1 %v1368_v43 }
  0x5a   :  { %1206 = vmatpush3.bf16.msra.mxu0 %v1367_v42  ;;  %1270 = vmatpush3.bf16.msra.mxu1 %v1369_v46 }
  0x5b   :  { %1207 = vmatprep.subr.bf16.mxu0 %v1370_v47  ;;  %1271 = vmatprep.subr.bf16.mxu1 %v1372_v49 }
  0x5c   :  { %1070 = vmatmul.mubr.msk.bf16.gmra.mrb[12].mxu0 %vm157_vm0, %v82_v40  ;;  %1078 = vmatmul.mubr.msk.bf16.gmra.mrb[12].mxu1 %vm157_vm0, %v82_v40 }
  0x5d   :  { %254 = vmatprep.mubr.bf16.mxu0 %v1481_v0  ;;  %367 = vmatprep.mubr.bf16.mxu1 %v1481_v0 }
  0x5e   :  { %1208 = vmatpush3.bf16.msra.mxu0 %v1371_v48  ;;  %1272 = vmatpush3.bf16.msra.mxu1 %v1373_v50 }
  0x5f   :  { %1209 = vmatprep.subr.bf16.mxu0 %v1374_v61  ;;  %1273 = vmatprep.subr.bf16.mxu1 %v1376_v62 }
  0x62   :  { %1210 = vmatpush3.bf16.msra.mxu0 %v1375_v63  ;;  %1274 = vmatpush3.bf16.msra.mxu1 %v1377_v1 }
  0x64   :  { %1071 = vmatmul.mubr.msk.bf16.gmra.mrb[16].mxu0 %vm157_vm0, %v83_v51  ;;  %1079 = vmatmul.mubr.msk.bf16.gmra.mrb[16].mxu1 %vm157_vm0, %v83_v51 }
  0x65   :  { %264 = vmatprep.mubr.bf16.mxu0 %v1481_v0  ;;  %377 = vmatprep.mubr.bf16.mxu1 %v1481_v0 }
  0x6c   :  { %1072 = vmatmul.mubr.msk.bf16.gmra.mrb[20].mxu0 %vm157_vm0, %v84_v54  ;;  %1080 = vmatmul.mubr.msk.bf16.gmra.mrb[20].mxu1 %vm157_vm0, %v84_v54 }
  0x6d   :  { %274 = vmatprep.mubr.bf16.mxu0 %v1481_v0  ;;  %387 = vmatprep.mubr.bf16.mxu1 %v1481_v0 }
  0x74   :  { %1073 = vmatmul.mubr.msk.bf16.gmra.mrb[24].mxu0 %vm157_vm0, %v85_v57  ;;  %1081 = vmatmul.mubr.msk.bf16.gmra.mrb[24].mxu1 %vm157_vm0, %v85_v57 }
  0x75   :  { %284 = vmatprep.mubr.bf16.mxu0 %v1481_v0  ;;  %397 = vmatprep.mubr.bf16.mxu1 %v1481_v0  ;;  %v95_v0 = vld [vmem:[%s1697_s2] sm:$0xf] }
  0x76   :  { %v1587_v8 = vrot.slane %v95_v0, %v99_v4  ;;  %v1589_v9 = vrot.slane %v95_v0, %v107_v5  ;;  %v1591_v10 = vrot.slane %v95_v0, %v103_v6  ;;  %v1593_v11 = vrot.slane %v95_v0, %v111_v7 }
  0x7c   :  { %1074 = vmatmul.mubr.msk.bf16.gmra.mrb[28].mxu0 %vm157_vm0, %v86_v60  ;;  %1082 = vmatmul.mubr.msk.bf16.gmra.mrb[28].mxu1 %vm157_vm0, %v86_v60 }
 0x117   :  { %v216_v12 = vpop.f32.mrb[0].mxu0  ;;  %v329_v13 = vpop.f32.mrb[0].mxu1 }
 0x118   :  { %v217_v14 = vadd.f32 %v216_v12, %v1587_v8  ;;  %v330_v15 = vadd.f32 %v329_v13, %v1589_v9  ;;  %v218_v16 = vpop.f32.mrb[1].mxu0  ;;  %v331_v17 = vpop.f32.mrb[1].mxu1 }
 0x119   :  { %v219_v18 = vadd.f32 %v218_v16, %v1591_v10  ;;  %v332_v19 = vadd.f32 %v331_v17, %v1593_v11  ;;  %v220_v20 = vpop.f32.mrb[2].mxu0  ;;  %v333_v21 = vpop.f32.mrb[2].mxu1 }
 0x11a   :  { %v410_v22 = vmax.f32 %v330_v15, 0.0  ;;  %v221_v23 = vadd.f32 %v220_v20, %v1587_v8  ;;  %v334_v24 = vadd.f32 %v333_v21, %v1589_v9  ;;  %v222_v25 = vpop.f32.mrb[3].mxu0  ;;  %v335_v26 = vpop.f32.mrb[3].mxu1  ;;  %v408_v30 = vmax.f32 %v217_v14, 0.0 }
 0x11b   :  { %v411_v27 = vmax.f32 %v332_v19, 0.0  ;;  %v223_v28 = vadd.f32 %v222_v25, %v1591_v10  ;;  %v336_v29 = vadd.f32 %v335_v26, %v1593_v11  ;;  %v409_v33 = vmax.f32 %v219_v18, 0.0 }
 0x11c   :  { %v412_v31 = vmax.f32 %v221_v23, 0.0  ;;  %v414_v32 = vmax.f32 %v334_v24, 0.0 }
 0x11d   :  { %v413_v34 = vmax.f32 %v223_v28, 0.0  ;;  %v415_v35 = vmax.f32 %v336_v29, 0.0 }
 0x11e   :  { %v472_v36 = vpack.c.bf16 %v412_v31, %v408_v30  ;;  %v474_v37 = vpack.c.bf16 %v414_v32, %v410_v22 }
 0x11f   :  { %v473_v38 = vpack.c.bf16 %v413_v34, %v409_v33  ;;  %v475_v39 = vpack.c.bf16 %v415_v35, %v411_v27  ;;  %v226_v40 = vpop.f32.mrb[4].mxu0  ;;  %v339_v41 = vpop.f32.mrb[4].mxu1 }
 0x120   :  { %v227_v42 = vadd.f32 %v226_v40, %v1587_v8  ;;  %v340_v43 = vadd.f32 %v339_v41, %v1589_v9  ;;  %v228_v44 = vpop.f32.mrb[5].mxu0  ;;  %v341_v45 = vpop.f32.mrb[5].mxu1 }
 0x121   :  { %v229_v46 = vadd.f32 %v228_v44, %v1591_v10  ;;  %v342_v47 = vadd.f32 %v341_v45, %v1593_v11  ;;  %v230_v48 = vpop.f32.mrb[6].mxu0  ;;  %v343_v49 = vpop.f32.mrb[6].mxu1  ;;  %799 = vmatprep.mubr.bf16.mxu0 %v473_v38  ;;  %896 = vmatprep.mubr.bf16.mxu1 %v475_v39 }
 0x122   :  { %v418_v50 = vmax.f32 %v340_v43, 0.0  ;;  %v231_v51 = vadd.f32 %v230_v48, %v1587_v8  ;;  %v344_v52 = vadd.f32 %v343_v49, %v1589_v9  ;;  %v232_v53 = vpop.f32.mrb[7].mxu0  ;;  %v345_v54 = vpop.f32.mrb[7].mxu1  ;;  %800 = vmatmul.mubr.bf16.vlgmr.msra.gmra.mrb[32].mxu0 %v472_v36  ;;  %897 = vmatmul.mubr.bf16.vlgmr.msra.gmra.mrb[32].mxu1 %v474_v37  ;;  %v416_v58 = vmax.f32 %v227_v42, 0.0 }
 0x123   :  { %v419_v55 = vmax.f32 %v342_v47, 0.0  ;;  %v233_v56 = vadd.f32 %v232_v53, %v1591_v10  ;;  %v346_v57 = vadd.f32 %v345_v54, %v1593_v11  ;;  %v417_v61 = vmax.f32 %v229_v46, 0.0 }
 0x124   :  { %v420_v59 = vmax.f32 %v231_v51, 0.0  ;;  %v422_v60 = vmax.f32 %v344_v52, 0.0 }
 0x125   :  { %v421_v62 = vmax.f32 %v233_v56, 0.0  ;;  %v423_v63 = vmax.f32 %v346_v57, 0.0 }
 0x126   :  { %v476_v1 = vpack.c.bf16 %v420_v59, %v416_v58  ;;  %v478_v2 = vpack.c.bf16 %v422_v60, %v418_v50 }
 0x127   :  { %v477_v3 = vpack.c.bf16 %v421_v62, %v417_v61  ;;  %v479_v4 = vpack.c.bf16 %v423_v63, %v419_v55  ;;  %v236_v5 = vpop.f32.mrb[8].mxu0  ;;  %v349_v0 = vpop.f32.mrb[8].mxu1 }
 0x128   :  { %v237_v6 = vadd.f32 %v236_v5, %v1587_v8  ;;  %v350_v7 = vadd.f32 %v349_v0, %v1589_v9  ;;  %v238_v12 = vpop.f32.mrb[9].mxu0  ;;  %v351_v13 = vpop.f32.mrb[9].mxu1 }
 0x129   :  { %v239_v14 = vadd.f32 %v238_v12, %v1591_v10  ;;  %v352_v15 = vadd.f32 %v351_v13, %v1593_v11  ;;  %v240_v16 = vpop.f32.mrb[10].mxu0  ;;  %v353_v17 = vpop.f32.mrb[10].mxu1  ;;  %807 = vmatprep.mubr.bf16.mxu0 %v477_v3  ;;  %904 = vmatprep.mubr.bf16.mxu1 %v479_v4 }
 0x12a   :  { %v426_v18 = vmax.f32 %v350_v7, 0.0  ;;  %v241_v19 = vadd.f32 %v240_v16, %v1587_v8  ;;  %v354_v20 = vadd.f32 %v353_v17, %v1589_v9  ;;  %v242_v21 = vpop.f32.mrb[11].mxu0  ;;  %v355_v22 = vpop.f32.mrb[11].mxu1  ;;  %808 = vmatmul.mubr.bf16.gmra.mrb[36].mxu0 %v476_v1  ;;  %905 = vmatmul.mubr.bf16.gmra.mrb[36].mxu1 %v478_v2  ;;  %v424_v26 = vmax.f32 %v237_v6, 0.0 }
 0x12b   :  { %v427_v23 = vmax.f32 %v352_v15, 0.0  ;;  %v243_v24 = vadd.f32 %v242_v21, %v1591_v10  ;;  %v356_v25 = vadd.f32 %v355_v22, %v1593_v11  ;;  %v425_v29 = vmax.f32 %v239_v14, 0.0 }
 0x12c   :  { %v428_v27 = vmax.f32 %v241_v19, 0.0  ;;  %v430_v28 = vmax.f32 %v354_v20, 0.0 }
 0x12d   :  { %v429_v30 = vmax.f32 %v243_v24, 0.0  ;;  %v431_v31 = vmax.f32 %v356_v25, 0.0 }
 0x12e   :  { %v480_v32 = vpack.c.bf16 %v428_v27, %v424_v26  ;;  %v482_v33 = vpack.c.bf16 %v430_v28, %v426_v18 }
 0x12f   :  { %v481_v34 = vpack.c.bf16 %v429_v30, %v425_v29  ;;  %v483_v35 = vpack.c.bf16 %v431_v31, %v427_v23  ;;  %v246_v36 = vpop.f32.mrb[12].mxu0  ;;  %v359_v37 = vpop.f32.mrb[12].mxu1 }
 0x130   :  { %v247_v38 = vadd.f32 %v246_v36, %v1587_v8  ;;  %v360_v39 = vadd.f32 %v359_v37, %v1589_v9  ;;  %v248_v40 = vpop.f32.mrb[13].mxu0  ;;  %v361_v41 = vpop.f32.mrb[13].mxu1 }
 0x131   :  { %v249_v42 = vadd.f32 %v248_v40, %v1591_v10  ;;  %v362_v43 = vadd.f32 %v361_v41, %v1593_v11  ;;  %v250_v44 = vpop.f32.mrb[14].mxu0  ;;  %v363_v45 = vpop.f32.mrb[14].mxu1  ;;  %815 = vmatprep.mubr.bf16.mxu0 %v481_v34  ;;  %912 = vmatprep.mubr.bf16.mxu1 %v483_v35 }
 0x132   :  { %v434_v46 = vmax.f32 %v360_v39, 0.0  ;;  %v251_v47 = vadd.f32 %v250_v44, %v1587_v8  ;;  %v364_v48 = vadd.f32 %v363_v45, %v1589_v9  ;;  %v252_v49 = vpop.f32.mrb[15].mxu0  ;;  %v365_v50 = vpop.f32.mrb[15].mxu1  ;;  %816 = vmatmul.mubr.bf16.gmra.mrb[40].mxu0 %v480_v32  ;;  %913 = vmatmul.mubr.bf16.gmra.mrb[40].mxu1 %v482_v33  ;;  %v432_v54 = vmax.f32 %v247_v38, 0.0 }
 0x133   :  { %v435_v51 = vmax.f32 %v362_v43, 0.0  ;;  %v253_v52 = vadd.f32 %v252_v49, %v1591_v10  ;;  %v366_v53 = vadd.f32 %v365_v50, %v1593_v11  ;;  %v433_v57 = vmax.f32 %v249_v42, 0.0 }
 0x134   :  { %v436_v55 = vmax.f32 %v251_v47, 0.0  ;;  %v438_v56 = vmax.f32 %v364_v48, 0.0 }
 0x135   :  { %v437_v58 = vmax.f32 %v253_v52, 0.0  ;;  %v439_v59 = vmax.f32 %v366_v53, 0.0 }
 0x136   :  { %v484_v60 = vpack.c.bf16 %v436_v55, %v432_v54  ;;  %v486_v61 = vpack.c.bf16 %v438_v56, %v434_v46 }
 0x137   :  { %v485_v62 = vpack.c.bf16 %v437_v58, %v433_v57  ;;  %v487_v63 = vpack.c.bf16 %v439_v59, %v435_v51  ;;  %v256_v1 = vpop.f32.mrb[16].mxu0  ;;  %v369_v2 = vpop.f32.mrb[16].mxu1 }
 0x138   :  { %v257_v3 = vadd.f32 %v256_v1, %v1587_v8  ;;  %v370_v4 = vadd.f32 %v369_v2, %v1589_v9  ;;  %v258_v5 = vpop.f32.mrb[17].mxu0  ;;  %v371_v0 = vpop.f32.mrb[17].mxu1 }
 0x139   :  { %v259_v6 = vadd.f32 %v258_v5, %v1591_v10  ;;  %v372_v7 = vadd.f32 %v371_v0, %v1593_v11  ;;  %v260_v12 = vpop.f32.mrb[18].mxu0  ;;  %v373_v13 = vpop.f32.mrb[18].mxu1  ;;  %823 = vmatprep.mubr.bf16.mxu0 %v485_v62  ;;  %920 = vmatprep.mubr.bf16.mxu1 %v487_v63 }
 0x13a   :  { %v442_v14 = vmax.f32 %v370_v4, 0.0  ;;  %v261_v15 = vadd.f32 %v260_v12, %v1587_v8  ;;  %v374_v16 = vadd.f32 %v373_v13, %v1589_v9  ;;  %v262_v17 = vpop.f32.mrb[19].mxu0  ;;  %v375_v18 = vpop.f32.mrb[19].mxu1  ;;  %824 = vmatmul.mubr.bf16.gmra.mrb[44].mxu0 %v484_v60  ;;  %921 = vmatmul.mubr.bf16.gmra.mrb[44].mxu1 %v486_v61  ;;  %v440_v22 = vmax.f32 %v257_v3, 0.0 }
 0x13b   :  { %v443_v19 = vmax.f32 %v372_v7, 0.0  ;;  %v263_v20 = vadd.f32 %v262_v17, %v1591_v10  ;;  %v376_v21 = vadd.f32 %v375_v18, %v1593_v11  ;;  %v441_v25 = vmax.f32 %v259_v6, 0.0 }
 0x13c   :  { %v444_v23 = vmax.f32 %v261_v15, 0.0  ;;  %v446_v24 = vmax.f32 %v374_v16, 0.0 }
 0x13d   :  { %v445_v26 = vmax.f32 %v263_v20, 0.0  ;;  %v447_v27 = vmax.f32 %v376_v21, 0.0 }
 0x13e   :  { %v488_v28 = vpack.c.bf16 %v444_v23, %v440_v22  ;;  %v490_v29 = vpack.c.bf16 %v446_v24, %v442_v14 }
 0x13f   :  { %v489_v30 = vpack.c.bf16 %v445_v26, %v441_v25  ;;  %v491_v31 = vpack.c.bf16 %v447_v27, %v443_v19  ;;  %v266_v32 = vpop.f32.mrb[20].mxu0  ;;  %v379_v33 = vpop.f32.mrb[20].mxu1 }
 0x140   :  { %v267_v34 = vadd.f32 %v266_v32, %v1587_v8  ;;  %v380_v35 = vadd.f32 %v379_v33, %v1589_v9  ;;  %v268_v36 = vpop.f32.mrb[21].mxu0  ;;  %v381_v37 = vpop.f32.mrb[21].mxu1 }
 0x141   :  { %v269_v38 = vadd.f32 %v268_v36, %v1591_v10  ;;  %v382_v39 = vadd.f32 %v381_v37, %v1593_v11  ;;  %v270_v40 = vpop.f32.mrb[22].mxu0  ;;  %v383_v41 = vpop.f32.mrb[22].mxu1  ;;  %831 = vmatprep.mubr.bf16.mxu0 %v489_v30  ;;  %928 = vmatprep.mubr.bf16.mxu1 %v491_v31 }
 0x142   :  { %v450_v42 = vmax.f32 %v380_v35, 0.0  ;;  %v271_v43 = vadd.f32 %v270_v40, %v1587_v8  ;;  %v384_v44 = vadd.f32 %v383_v41, %v1589_v9  ;;  %v272_v45 = vpop.f32.mrb[23].mxu0  ;;  %v385_v46 = vpop.f32.mrb[23].mxu1  ;;  %832 = vmatmul.mubr.bf16.gmra.mrb[48].mxu0 %v488_v28  ;;  %929 = vmatmul.mubr.bf16.gmra.mrb[48].mxu1 %v490_v29  ;;  %v448_v50 = vmax.f32 %v267_v34, 0.0 }
 0x143   :  { %v451_v47 = vmax.f32 %v382_v39, 0.0  ;;  %v273_v48 = vadd.f32 %v272_v45, %v1591_v10  ;;  %v386_v49 = vadd.f32 %v385_v46, %v1593_v11  ;;  %v449_v53 = vmax.f32 %v269_v38, 0.0 }
 0x144   :  { %v452_v51 = vmax.f32 %v271_v43, 0.0  ;;  %v454_v52 = vmax.f32 %v384_v44, 0.0 }
 0x145   :  { %v453_v54 = vmax.f32 %v273_v48, 0.0  ;;  %v455_v55 = vmax.f32 %v386_v49, 0.0 }
 0x146   :  { %v492_v56 = vpack.c.bf16 %v452_v51, %v448_v50  ;;  %v494_v57 = vpack.c.bf16 %v454_v52, %v450_v42 }
 0x147   :  { %v493_v58 = vpack.c.bf16 %v453_v54, %v449_v53  ;;  %v495_v59 = vpack.c.bf16 %v455_v55, %v451_v47  ;;  %v276_v60 = vpop.f32.mrb[24].mxu0  ;;  %v389_v61 = vpop.f32.mrb[24].mxu1 }
 0x148   :  { %v277_v62 = vadd.f32 %v276_v60, %v1587_v8  ;;  %v390_v63 = vadd.f32 %v389_v61, %v1589_v9  ;;  %v278_v1 = vpop.f32.mrb[25].mxu0  ;;  %v391_v2 = vpop.f32.mrb[25].mxu1 }
 0x149   :  { %v279_v3 = vadd.f32 %v278_v1, %v1591_v10  ;;  %v392_v4 = vadd.f32 %v391_v2, %v1593_v11  ;;  %v280_v5 = vpop.f32.mrb[26].mxu0  ;;  %v393_v0 = vpop.f32.mrb[26].mxu1  ;;  %839 = vmatprep.mubr.bf16.mxu0 %v493_v58  ;;  %936 = vmatprep.mubr.bf16.mxu1 %v495_v59 }
 0x14a   :  { %v458_v6 = vmax.f32 %v390_v63, 0.0  ;;  %v281_v7 = vadd.f32 %v280_v5, %v1587_v8  ;;  %v394_v12 = vadd.f32 %v393_v0, %v1589_v9  ;;  %v282_v13 = vpop.f32.mrb[27].mxu0  ;;  %v395_v14 = vpop.f32.mrb[27].mxu1  ;;  %840 = vmatmul.mubr.bf16.gmra.mrb[52].mxu0 %v492_v56  ;;  %937 = vmatmul.mubr.bf16.gmra.mrb[52].mxu1 %v494_v57  ;;  %v456_v18 = vmax.f32 %v277_v62, 0.0 }
 0x14b   :  { %v459_v15 = vmax.f32 %v392_v4, 0.0  ;;  %v283_v16 = vadd.f32 %v282_v13, %v1591_v10  ;;  %v396_v17 = vadd.f32 %v395_v14, %v1593_v11  ;;  %v457_v21 = vmax.f32 %v279_v3, 0.0 }
 0x14c   :  { %v460_v19 = vmax.f32 %v281_v7, 0.0  ;;  %v462_v20 = vmax.f32 %v394_v12, 0.0 }
 0x14d   :  { %v461_v22 = vmax.f32 %v283_v16, 0.0  ;;  %v463_v23 = vmax.f32 %v396_v17, 0.0 }
 0x14e   :  { %v496_v24 = vpack.c.bf16 %v460_v19, %v456_v18  ;;  %v498_v25 = vpack.c.bf16 %v462_v20, %v458_v6 }
 0x14f   :  { %v497_v26 = vpack.c.bf16 %v461_v22, %v457_v21  ;;  %v499_v27 = vpack.c.bf16 %v463_v23, %v459_v15  ;;  %v286_v28 = vpop.f32.mrb[28].mxu0  ;;  %v399_v29 = vpop.f32.mrb[28].mxu1 }
 0x150   :  { %v287_v30 = vadd.f32 %v286_v28, %v1587_v8  ;;  %v400_v31 = vadd.f32 %v399_v29, %v1589_v9  ;;  %v288_v32 = vpop.f32.mrb[29].mxu0  ;;  %v401_v33 = vpop.f32.mrb[29].mxu1 }
 0x151   :  { %v289_v34 = vadd.f32 %v288_v32, %v1591_v10  ;;  %v402_v35 = vadd.f32 %v401_v33, %v1593_v11  ;;  %v290_v36 = vpop.f32.mrb[30].mxu0  ;;  %v403_v37 = vpop.f32.mrb[30].mxu1  ;;  %847 = vmatprep.mubr.bf16.mxu0 %v497_v26  ;;  %944 = vmatprep.mubr.bf16.mxu1 %v499_v27 }
 0x152   :  { %v466_v38 = vmax.f32 %v400_v31, 0.0  ;;  %v291_v39 = vadd.f32 %v290_v36, %v1587_v8  ;;  %v404_v40 = vadd.f32 %v403_v37, %v1589_v9  ;;  %v292_v41 = vpop.f32.mrb[31].mxu0  ;;  %v405_v42 = vpop.f32.mrb[31].mxu1  ;;  %848 = vmatmul.mubr.bf16.gmra.mrb[56].mxu0 %v496_v24  ;;  %945 = vmatmul.mubr.bf16.gmra.mrb[56].mxu1 %v498_v25  ;;  %v464_v46 = vmax.f32 %v287_v30, 0.0 }
 0x153   :  { %v467_v43 = vmax.f32 %v402_v35, 0.0  ;;  %v293_v44 = vadd.f32 %v292_v41, %v1591_v10  ;;  %v406_v45 = vadd.f32 %v405_v42, %v1593_v11  ;;  %v465_v49 = vmax.f32 %v289_v34, 0.0  ;;  %v1662_v10 = vld [vmem:[%s1699_s4] ss:$0 sm:$0xff] }
 0x154   :  { %v468_v47 = vmax.f32 %v291_v39, 0.0  ;;  %v470_v48 = vmax.f32 %v404_v40, 0.0 }
 0x155   :  { %v469_v50 = vmax.f32 %v293_v44, 0.0  ;;  %v471_v51 = vmax.f32 %v406_v45, 0.0 }
 0x156   :  { %v500_v52 = vpack.c.bf16 %v468_v47, %v464_v46  ;;  %v502_v53 = vpack.c.bf16 %v470_v48, %v466_v38 }
 0x157   :  { %v501_v8 = vpack.c.bf16 %v469_v50, %v465_v49  ;;  %v503_v54 = vpack.c.bf16 %v471_v51, %v467_v43 }
 0x159   :  { %855 = vmatprep.mubr.bf16.mxu0 %v501_v8  ;;  %952 = vmatprep.mubr.bf16.mxu1 %v503_v54 }
 0x15a   :  { %856 = vmatmul.mubr.bf16.gmra.mrb[60].mxu0 %v500_v52  ;;  %953 = vmatmul.mubr.bf16.gmra.mrb[60].mxu1 %v502_v53 }
 0x1f5   :  { %v1211_v9 = vpop.f32.mrb[32].mxu0  ;;  %v1275_v55 = vpop.f32.mrb[32].mxu1 }
 0x1f6   :  { %v1212_v11 = vpop.f32.mrb[33].mxu0  ;;  %v1276_v56 = vpop.f32.mrb[33].mxu1 }
 0x1f7   :  { %v1213_v57 = vadd.f32 %v1212_v11, %v1211_v9  ;;  %v1277_v58 = vadd.f32 %v1276_v56, %v1275_v55  ;;  %v1214_v59 = vpop.f32.mrb[34].mxu0  ;;  %v1278_v60 = vpop.f32.mrb[34].mxu1 }
 0x1f8   :  { %v1215_v61 = vpop.f32.mrb[35].mxu0  ;;  %v1279_v62 = vpop.f32.mrb[35].mxu1 }
 0x1f9   :  { %v802_v63 = vadd.f32 %v1213_v57, %v1662_v10  ;;  %v1216_v1 = vadd.f32 %v1215_v61, %v1214_v59  ;;  %v1280_v2 = vadd.f32 %v1279_v62, %v1278_v60 }
 0x1fb   :  { %v899_v3 = vadd.f32 %v1277_v58, %v802_v63  ;;  %v805_v4 = vadd.f32 %v1216_v1, %v1662_v10 }
 0x1fd   :  { %v902_v5 = vadd.f32 %v1280_v2, %v805_v4  ;;  %v1217_v0 = vpop.f32.mrb[36].mxu0  ;;  %v1281_v6 = vpop.f32.mrb[36].mxu1 }
 0x1fe   :  { %v1218_v7 = vpop.f32.mrb[37].mxu0  ;;  %v1282_v12 = vpop.f32.mrb[37].mxu1 }
 0x1ff   :  { %v1151_v13 = vpack.c.bf16 %v902_v5, %v899_v3  ;;  %v1219_v14 = vadd.f32 %v1218_v7, %v1217_v0  ;;  %v1283_v15 = vadd.f32 %v1282_v12, %v1281_v6  ;;  %v1220_v16 = vpop.f32.mrb[38].mxu0  ;;  %v1284_v17 = vpop.f32.mrb[38].mxu1 }
 0x200   :  { %v1221_v18 = vpop.f32.mrb[39].mxu0  ;;  %v1285_v19 = vpop.f32.mrb[39].mxu1 }
 0x201   :  { %1152 = vst [vmem:[#allocation8] sm:$0xff] %v1151_v13   ;;  %v810_v20 = vadd.f32 %v1219_v14, %v1662_v10  ;;  %v1222_v21 = vadd.f32 %v1221_v18, %v1220_v16  ;;  %v1286_v22 = vadd.f32 %v1285_v19, %v1284_v17 }
 0x203   :  { %v907_v23 = vadd.f32 %v1283_v15, %v810_v20  ;;  %v813_v24 = vadd.f32 %v1222_v21, %v1662_v10 }
 0x205   :  { %v910_v25 = vadd.f32 %v1286_v22, %v813_v24  ;;  %v1223_v26 = vpop.f32.mrb[40].mxu0  ;;  %v1287_v27 = vpop.f32.mrb[40].mxu1 }
 0x206   :  { %v1224_v28 = vpop.f32.mrb[41].mxu0  ;;  %v1288_v29 = vpop.f32.mrb[41].mxu1 }
 0x207   :  { %v1156_v30 = vpack.c.bf16 %v910_v25, %v907_v23  ;;  %v1225_v31 = vadd.f32 %v1224_v28, %v1223_v26  ;;  %v1289_v32 = vadd.f32 %v1288_v29, %v1287_v27  ;;  %v1226_v33 = vpop.f32.mrb[42].mxu0  ;;  %v1290_v34 = vpop.f32.mrb[42].mxu1 }
 0x208   :  { %v1227_v35 = vpop.f32.mrb[43].mxu0  ;;  %v1291_v36 = vpop.f32.mrb[43].mxu1 }
 0x209   :  { %1188 = vst [vmem:[#allocation8 + $0x8] sm:$0xff] %v1156_v30   ;;  %v818_v37 = vadd.f32 %v1225_v31, %v1662_v10  ;;  %v1228_v38 = vadd.f32 %v1227_v35, %v1226_v33  ;;  %v1292_v39 = vadd.f32 %v1291_v36, %v1290_v34 }
 0x20b   :  { %v915_v40 = vadd.f32 %v1289_v32, %v818_v37  ;;  %v821_v41 = vadd.f32 %v1228_v38, %v1662_v10 }
 0x20d   :  { %v918_v42 = vadd.f32 %v1292_v39, %v821_v41  ;;  %v1229_v43 = vpop.f32.mrb[44].mxu0  ;;  %v1293_v44 = vpop.f32.mrb[44].mxu1 }
 0x20e   :  { %v1230_v45 = vpop.f32.mrb[45].mxu0  ;;  %v1294_v46 = vpop.f32.mrb[45].mxu1 }
 0x20f   :  { %v1161_v47 = vpack.c.bf16 %v918_v42, %v915_v40  ;;  %v1231_v48 = vadd.f32 %v1230_v45, %v1229_v43  ;;  %v1295_v49 = vadd.f32 %v1294_v46, %v1293_v44  ;;  %v1232_v50 = vpop.f32.mrb[46].mxu0  ;;  %v1296_v51 = vpop.f32.mrb[46].mxu1 }
 0x210   :  { %v1233_v52 = vpop.f32.mrb[47].mxu0  ;;  %v1297_v53 = vpop.f32.mrb[47].mxu1 }
 0x211   :  { %1189 = vst [vmem:[#allocation8 + $0x10] sm:$0xff] %v1161_v47   ;;  %v826_v8 = vadd.f32 %v1231_v48, %v1662_v10  ;;  %v1234_v54 = vadd.f32 %v1233_v52, %v1232_v50  ;;  %v1298_v9 = vadd.f32 %v1297_v53, %v1296_v51 }
 0x213   :  { %v923_v55 = vadd.f32 %v1295_v49, %v826_v8  ;;  %v829_v11 = vadd.f32 %v1234_v54, %v1662_v10 }
 0x215   :  { %v926_v56 = vadd.f32 %v1298_v9, %v829_v11  ;;  %v1235_v57 = vpop.f32.mrb[48].mxu0  ;;  %v1299_v58 = vpop.f32.mrb[48].mxu1 }
 0x216   :  { %v1236_v59 = vpop.f32.mrb[49].mxu0  ;;  %v1300_v60 = vpop.f32.mrb[49].mxu1 }
 0x217   :  { %v1166_v61 = vpack.c.bf16 %v926_v56, %v923_v55  ;;  %v1237_v62 = vadd.f32 %v1236_v59, %v1235_v57  ;;  %v1301_v63 = vadd.f32 %v1300_v60, %v1299_v58  ;;  %v1238_v1 = vpop.f32.mrb[50].mxu0  ;;  %v1302_v2 = vpop.f32.mrb[50].mxu1 }
 0x218   :  { %v1239_v3 = vpop.f32.mrb[51].mxu0  ;;  %v1303_v4 = vpop.f32.mrb[51].mxu1 }
 0x219   :  { %1190 = vst [vmem:[#allocation8 + $0x18] sm:$0xff] %v1166_v61   ;;  %v834_v5 = vadd.f32 %v1237_v62, %v1662_v10  ;;  %v1240_v0 = vadd.f32 %v1239_v3, %v1238_v1  ;;  %v1304_v6 = vadd.f32 %v1303_v4, %v1302_v2 }
 0x21b   :  { %v931_v7 = vadd.f32 %v1301_v63, %v834_v5  ;;  %v837_v12 = vadd.f32 %v1240_v0, %v1662_v10 }
 0x21d   :  { %v934_v13 = vadd.f32 %v1304_v6, %v837_v12  ;;  %v1241_v14 = vpop.f32.mrb[52].mxu0  ;;  %v1305_v15 = vpop.f32.mrb[52].mxu1 }
 0x21e   :  { %v1242_v16 = vpop.f32.mrb[53].mxu0  ;;  %v1306_v17 = vpop.f32.mrb[53].mxu1 }
 0x21f   :  { %v1171_v18 = vpack.c.bf16 %v934_v13, %v931_v7  ;;  %v1243_v19 = vadd.f32 %v1242_v16, %v1241_v14  ;;  %v1307_v20 = vadd.f32 %v1306_v17, %v1305_v15  ;;  %v1244_v21 = vpop.f32.mrb[54].mxu0  ;;  %v1308_v22 = vpop.f32.mrb[54].mxu1 }
 0x220   :  { %v1245_v23 = vpop.f32.mrb[55].mxu0  ;;  %v1309_v24 = vpop.f32.mrb[55].mxu1 }
 0x221   :  { %1191 = vst [vmem:[#allocation8 + $0x20] sm:$0xff] %v1171_v18   ;;  %v842_v25 = vadd.f32 %v1243_v19, %v1662_v10  ;;  %v1246_v26 = vadd.f32 %v1245_v23, %v1244_v21  ;;  %v1310_v27 = vadd.f32 %v1309_v24, %v1308_v22 }
 0x223   :  { %v939_v28 = vadd.f32 %v1307_v20, %v842_v25  ;;  %v845_v29 = vadd.f32 %v1246_v26, %v1662_v10 }
 0x225   :  { %v942_v30 = vadd.f32 %v1310_v27, %v845_v29  ;;  %v1247_v31 = vpop.f32.mrb[56].mxu0  ;;  %v1311_v32 = vpop.f32.mrb[56].mxu1 }
 0x226   :  { %v1248_v33 = vpop.f32.mrb[57].mxu0  ;;  %v1312_v34 = vpop.f32.mrb[57].mxu1 }
 0x227   :  { %v1176_v35 = vpack.c.bf16 %v942_v30, %v939_v28  ;;  %v1249_v36 = vadd.f32 %v1248_v33, %v1247_v31  ;;  %v1313_v37 = vadd.f32 %v1312_v34, %v1311_v32  ;;  %v1250_v38 = vpop.f32.mrb[58].mxu0  ;;  %v1314_v39 = vpop.f32.mrb[58].mxu1 }
 0x228   :  { %v1251_v40 = vpop.f32.mrb[59].mxu0  ;;  %v1315_v41 = vpop.f32.mrb[59].mxu1 }
 0x229   :  { %1192 = vst [vmem:[#allocation8 + $0x28] sm:$0xff] %v1176_v35   ;;  %v850_v42 = vadd.f32 %v1249_v36, %v1662_v10  ;;  %v1252_v43 = vadd.f32 %v1251_v40, %v1250_v38  ;;  %v1316_v44 = vadd.f32 %v1315_v41, %v1314_v39 }
 0x22b   :  { %v947_v45 = vadd.f32 %v1313_v37, %v850_v42  ;;  %v853_v46 = vadd.f32 %v1252_v43, %v1662_v10 }
 0x22d   :  { %v950_v47 = vadd.f32 %v1316_v44, %v853_v46  ;;  %v1253_v48 = vpop.f32.mrb[60].mxu0  ;;  %v1317_v49 = vpop.f32.mrb[60].mxu1 }
 0x22e   :  { %v1254_v50 = vpop.f32.mrb[61].mxu0  ;;  %v1318_v51 = vpop.f32.mrb[61].mxu1 }
 0x22f   :  { %v1181_v52 = vpack.c.bf16 %v950_v47, %v947_v45  ;;  %v1255_v53 = vadd.f32 %v1254_v50, %v1253_v48  ;;  %v1319_v8 = vadd.f32 %v1318_v51, %v1317_v49  ;;  %v1256_v54 = vpop.f32.mrb[62].mxu0  ;;  %v1320_v9 = vpop.f32.mrb[62].mxu1 }
 0x230   :  { %v1257_v55 = vpop.f32.mrb[63].mxu0  ;;  %v1321_v11 = vpop.f32.mrb[63].mxu1 }
 0x231   :  { %1193 = vst [vmem:[#allocation8 + $0x30] sm:$0xff] %v1181_v52   ;;  %v858_v56 = vadd.f32 %v1255_v53, %v1662_v10  ;;  %v1258_v57 = vadd.f32 %v1257_v55, %v1256_v54  ;;  %v1322_v58 = vadd.f32 %v1321_v11, %v1320_v9 }
 0x233   :  { %v955_v59 = vadd.f32 %v1319_v8, %v858_v56  ;;  %v861_v60 = vadd.f32 %v1258_v57, %v1662_v10 }
 0x235   :  { %v958_v61 = vadd.f32 %v1322_v58, %v861_v60 }
 0x237   :  { %v1186_v62 = vpack.c.bf16 %v958_v61, %v955_v59 }
 0x239   :  { %1194 = vst [vmem:[#allocation8 + $0x38] sm:$0xff] %v1186_v62  }
 0x23a   :  { %1045 = vsyncadd [#allocation4], 960  ;;  %s1482_s4 = smov [#allocation8]  }
 0x23b   :  { %s1046_s11 = sshll.u32 %s1482_s4, 4  ;;  %s1047_s11 = int_to_ptr.vmem [resolvable:$true] %s1046_s11 }
 0x23c   :  { %s1444_s12 = scalar_lea.vmem %s1047_s11, 64  ;;  %s1448_s13 = scalar_lea.vmem %s1047_s11, 1024 }
 0x23d   :  { %p1445_p10 = scmp.ne.s32.totalorder %s1047_s11, %s1444_s12  ;;  %p1449_p11 = scmp.lt.s32.totalorder %s1047_s11, %s1047_s11 }
 0x23e   :  { %p1450_p12 = scmp.lt.s32.totalorder %s1448_s13, %s1444_s12 }
 0x240   :  { %p1451_p13 = por %p1450_p12, %p1449_p11 }
 0x242   :  { %p1452_p0 = pnand %p1451_p13, %p1445_p10 }
 0x244   :  { %1455 = shalt.err (!%p1452_p0)
}
 0x245   :  { %s1456_s16 = scalar_lea.hbm %s1700_s5, 64 }
 0x246   :  { %p1457_p1 = scmp.ne.s32.totalorder %s1700_s5, %s1456_s16  ;;  %p1460_p2 = scmp.lt.u32.totalorder %s1456_s16, %s1700_s5 }
 0x248   :  { %p1462_p3 = pnand %p1460_p2, %p1457_p1 }
 0x24a   :  { %1465 = shalt.err (!%p1462_p3)
}
 0x24b   :  { %1052 = dma.vmem_to_hbm [thread:$0]  %s1047_s11, 64, %s1700_s5, [#allocation4], %s1479_s0, %s1479_s0, %s1480_s6  }
 0x24c   :  { %1470 = dma.done.wait [#allocation4], 1024  }
 0x24d   :  { %1471 = vsyncadd [#allocation4], 4294966272 }
 0x24e   :  { %1056 = vsyncpa [#allocation3], 1 }
 0x24f   :  { %1057 = vsyncpa [#allocation6], 1 }
 0x250   :  { %1058 = vsyncpa [#allocation4], 1 }

// kernel: tpu_custom_call.1
= control target key start
LH: loop header
LB: loop body
LE: loop exit
PB: predicated region body
PF: predicated region fallthrough
CT: control target
= control target key end

     0   :  { %10 = vsyncpa [#allocation3], 0  ;;  %s1695_s0 = inlined_call_operand.hbm [shape: f32[8,32], index: 0, kind: input, shape index: {}]   ;;  %s1696_s1 = inlined_call_operand.hbm [shape: bf16[32,512], index: 1, kind: input, shape index: {}]   ;;  %s1697_s2 = inlined_call_operand.vmem [shape: f32[1,512], index: 2, kind: input, shape index: {}]   ;;  %s1698_s3 = inlined_call_operand.hbm [shape: bf16[512,128], index: 3, kind: input, shape index: {}]   ;;  %s1699_s4 = inlined_call_operand.vmem [shape: f32[1,128], index: 4, kind: input, shape index: {}]   ;;  %s1700_s5 = inlined_call_operand.hbm [shape: bf16[8,128], index: 5, kind: output, shape index: {}]  }
   0x1   :  { %11 = vsyncpa [#allocation6], 0 }
   0x2   :  { %12 = vsyncpa [#allocation4], 0 }
   0x3   :  { %17 = vsyncadd [#allocation3], 1920  ;;  %s1472_s18 = smov [#allocation5]   ;;  %s1378_s22 = scalar_lea.hbm %s1696_s1, 1024 }
   0x4   :  { %s30_s19 = sshll.u32 %s1472_s18, 4  ;;  %p1379_p0 = scmp.ne.s32.totalorder %s1696_s1, %s1378_s22  ;;  %s31_s19 = int_to_ptr.vmem [resolvable:$true] %s30_s19 }
   0x5   :  { %p1382_p1 = scmp.lt.u32.totalorder %s1378_s22, %s1696_s1 }
   0x7   :  { %p1384_p2 = pnand %p1382_p1, %p1379_p0 }
   0x9   :  { %1387 = shalt.err (!%p1384_p2)
}
   0xa   :  { %s1388_s27 = scalar_lea.vmem %s31_s19, 1024  ;;  %p1393_p4 = scmp.lt.s32.totalorder %s31_s19, %s31_s19 }
   0xb   :  { %p1389_p3 = scmp.ne.s32.totalorder %s31_s19, %s1388_s27  ;;  %p1394_p5 = scmp.lt.s32.totalorder %s1388_s27, %s1388_s27 }
   0xd   :  { %p1395_p6 = por %p1394_p5, %p1393_p4 }
   0xf   :  { %p1396_p7 = pnand %p1395_p6, %p1389_p3 }
  0x11   :  { %1399 = shalt.err (!%p1396_p7)
}
  0x12   :  { %s1473_s28 = smov 256   ;;  %s1474_s29 = smov 16  }
  0x13   :  { %36 = dma.hbm_to_vmem [thread:$0]  %s1696_s1, 1024, %s31_s19, [#allocation6], %s1473_s28, %s1473_s28, %s1474_s29  }
  0x14   :  { %s1475_s7 = smov [#allocation2]   ;;  %s1400_s11 = scalar_lea.hbm %s1695_s0, 128 }
  0x15   :  { %s18_s8 = sshll.u32 %s1475_s7, 4  ;;  %p1401_p8 = scmp.ne.s32.totalorder %s1695_s0, %s1400_s11  ;;  %s19_s8 = int_to_ptr.vmem [resolvable:$true] %s18_s8 }
  0x16   :  { %p1404_p9 = scmp.lt.u32.totalorder %s1400_s11, %s1695_s0 }
  0x18   :  { %p1406_p10 = pnand %p1404_p9, %p1401_p8 }
  0x1a   :  { %1409 = shalt.err (!%p1406_p10)
}
  0x1b   :  { %s1410_s16 = scalar_lea.vmem %s19_s8, 128  ;;  %s1414_s1 = scalar_lea.vmem %s19_s8, 2048 }
  0x1c   :  { %p1411_p11 = scmp.ne.s32.totalorder %s19_s8, %s1410_s16  ;;  %p1415_p12 = scmp.lt.s32.totalorder %s19_s8, %s19_s8 }
  0x1d   :  { %p1416_p13 = scmp.lt.s32.totalorder %s1414_s1, %s1410_s16 }
  0x1f   :  { %p1417_p0 = por %p1416_p13, %p1415_p12 }
  0x21   :  { %p1418_p1 = pnand %p1417_p0, %p1411_p11 }
  0x23   :  { %1421 = shalt.err (!%p1418_p1)
}
  0x24   :  { %s1476_s17 = smov 128   ;;  %s1477_s18 = smov 8  }
  0x25   :  { %24 = dma.hbm_to_vmem [thread:$0]  %s1695_s0, 128, %s19_s8, [#allocation3], %s1476_s17, %s1476_s17, %s1477_s18  }
  0x26   :  { %s1478_s21 = smov [#allocation7]   ;;  %s1422_s25 = scalar_lea.hbm %s1698_s3, 4096 }
  0x27   :  { %s44_s22 = sshll.u32 %s1478_s21, 4  ;;  %p1423_p2 = scmp.ne.s32.totalorder %s1698_s3, %s1422_s25  ;;  %s45_s22 = int_to_ptr.vmem [resolvable:$true] %s44_s22 }
  0x28   :  { %p1426_p3 = scmp.lt.u32.totalorder %s1422_s25, %s1698_s3 }
  0x2a   :  { %p1428_p4 = pnand %p1426_p3, %p1423_p2 }
  0x2c   :  { %1431 = shalt.err (!%p1428_p4)
}
  0x2d   :  { %s1432_s30 = scalar_lea.vmem %s45_s22, 4096  ;;  %p1437_p6 = scmp.lt.s32.totalorder %s45_s22, %s45_s22 }
  0x2e   :  { %p1433_p5 = scmp.ne.s32.totalorder %s45_s22, %s1432_s30  ;;  %p1438_p7 = scmp.lt.s32.totalorder %s1432_s30, %s1432_s30 }
  0x30   :  { %p1439_p8 = por %p1438_p7, %p1437_p6 }
  0x32   :  { %p1440_p9 = pnand %p1439_p8, %p1433_p5 }
  0x34   :  { %1443 = shalt.err (!%p1440_p9)
}
  0x35   :  { %s1479_s0 = smov 64   ;;  %s1480_s6 = smov 4  }
  0x36   :  { %50 = dma.hbm_to_vmem [thread:$0]  %s1698_s3, 4096, %s45_s22, [#allocation6], %s1479_s0, %s1479_s0, %s1480_s6  }
  0x37   :  { %1466 = dma.done.wait [#allocation3], 2048  }
  0x38   :  { %1467 = vsyncadd [#allocation3], 4294965248 }
  0x39   :  { %1468 = dma.done.wait [#allocation6], 5120  }
  0x3a   :  { %1469 = vsyncadd [#allocation6], 4294962176  ;;  %v1481_v0 = vmov 0   ;;  %v1334_v1 = vld [vmem:[#allocation5 + $0x4] ss:$16 sps:$4 sm:$0xff]   ;;  %v64_v10 = vld [vmem:[#allocation2 + $0x8] sm:$0xff] }
  0x3b   :  { %214 = vmatprep.mubr.bf16.mxu0 %v1481_v0  ;;  %327 = vmatprep.mubr.bf16.mxu1 %v1481_v0  ;;  %v1336_v2 = vld [vmem:[#allocation5 + $0xc] ss:$16 sps:$4 sm:$0xff]   ;;  %v1338_v3 = vld [vmem:[#allocation5] ss:$16 sps:$4 sm:$0xff]   ;;  %v1339_v4 = vld [vmem:[#allocation5 + $0x8] ss:$16 sps:$4 sm:$0xff]  }
  0x3c   :  { %182 = vmatprep.subr.bf16.mxu0 %v1334_v1  ;;  %295 = vmatprep.subr.bf16.mxu1 %v1336_v2  ;;  %v1340_v5 = vld [vmem:[#allocation5 + $0x24] ss:$16 sps:$4 sm:$0xff]   ;;  %v1342_v6 = vld [vmem:[#allocation5 + $0x2c] ss:$16 sps:$4 sm:$0xff]   ;;  %v1344_v7 = vld [vmem:[#allocation5 + $0x20] ss:$16 sps:$4 sm:$0xff]   ;;  %v97_v2 = vlaneseq }
  0x3d   :  { %183 = vmatpush1.bf16.msra.mxu0 %v1338_v3  ;;  %296 = vmatpush1.bf16.msra.mxu1 %v1339_v4  ;;  %v1345_v8 = vld [vmem:[#allocation5 + $0x28] ss:$16 sps:$4 sm:$0xff]   ;;  %v63_v9 = vld [vmem:[#allocation2] sm:$0xff]  ;;  %vm157_vm0 = vcmask 261120   ;;  %v65_v12 = vld [vmem:[#allocation2 + $0x10] sm:$0xff] }
  0x3e   :  { %184 = vmatprep.subr.bf16.mxu0 %v1340_v5  ;;  %297 = vmatprep.subr.bf16.mxu1 %v1342_v6  ;;  %v79_v11 = vpack.c.bf16 %v64_v10, %v63_v9  ;;  %v66_v13 = vld [vmem:[#allocation2 + $0x18] sm:$0xff]  ;;  %v1346_v14 = vld [vmem:[#allocation7 + $0x40] sm:$0xff]   ;;  %v1350_v19 = vld [vmem:[#allocation7 + $0x48] sm:$0xff]   ;;  %v98_v3 = vshrl.u32 %v97_v2, 7 }
  0x3f   :  { %v1347_v15 = vld [vmem:[#allocation7] sm:$0xff]   ;;  %v80_v18 = vpack.c.bf16 %v66_v13, %v65_v12  ;;  %v1351_v20 = vld [vmem:[#allocation7 + $0x8] sm:$0xff]   ;;  %v1354_v25 = vld [vmem:[#allocation7 + $0x50] sm:$0xff]  }
  0x40   :  { %v1348_v16 = vld [vmem:[#allocation7 + $0xc0] sm:$0xff]   ;;  %v1352_v21 = vld [vmem:[#allocation7 + $0xc8] sm:$0xff]   ;;  %v1355_v26 = vld [vmem:[#allocation7 + $0x10] sm:$0xff]   ;;  %v99_v4 = vsub.s32 0, %v98_v3  ;;  %v107_v5 = vsub.s32 2, %v98_v3  ;;  %v103_v6 = vsub.s32 1, %v98_v3 }
  0x41   :  { %185 = vmatpush1.bf16.msra.mxu0 %v1344_v7  ;;  %298 = vmatpush1.bf16.msra.mxu1 %v1345_v8  ;;  %v1349_v17 = vld [vmem:[#allocation7 + $0x80] sm:$0xff]   ;;  %v68_v23 = vld [vmem:[#allocation2 + $0x28] sm:$0xff]  ;;  %v1356_v27 = vld [vmem:[#allocation7 + $0xd0] sm:$0xff]   ;;  %v111_v7 = vsub.s32 3, %v98_v3 }
  0x42   :  { %1195 = vmatprep.subr.bf16.mxu0 %v1346_v14  ;;  %1259 = vmatprep.subr.bf16.mxu1 %v1348_v16  ;;  %v67_v22 = vld [vmem:[#allocation2 + $0x20] sm:$0xff]  ;;  %v1353_v24 = vld [vmem:[#allocation7 + $0x88] sm:$0xff]   ;;  %v1357_v28 = vld [vmem:[#allocation7 + $0x90] sm:$0xff]  }
  0x43   :  { %v81_v29 = vpack.c.bf16 %v68_v23, %v67_v22  ;;  %v1358_v30 = vld [vmem:[#allocation7 + $0x58] sm:$0xff]   ;;  %v69_v33 = vld [vmem:[#allocation2 + $0x30] sm:$0xff]  ;;  %v1362_v36 = vld [vmem:[#allocation7 + $0x60] sm:$0xff]  }
  0x44   :  { %1067 = vmatmul.mubr.msk.bf16.vlgmr.msra.gmra.mrb[0].mxu0 %vm157_vm0, %v79_v11  ;;  %1075 = vmatmul.mubr.msk.bf16.vlgmr.msra.gmra.mrb[0].mxu1 %vm157_vm0, %v79_v11  ;;  %v1359_v31 = vld [vmem:[#allocation7 + $0x18] sm:$0xff]   ;;  %v1363_v37 = vld [vmem:[#allocation7 + $0x20] sm:$0xff]   ;;  %v1366_v41 = vld [vmem:[#allocation7 + $0x68] sm:$0xff]  }
  0x45   :  { %224 = vmatprep.mubr.bf16.mxu0 %v1481_v0  ;;  %337 = vmatprep.mubr.bf16.mxu1 %v1481_v0  ;;  %v1360_v32 = vld [vmem:[#allocation7 + $0xd8] sm:$0xff]   ;;  %v1364_v38 = vld [vmem:[#allocation7 + $0xe0] sm:$0xff]   ;;  %v1367_v42 = vld [vmem:[#allocation7 + $0x28] sm:$0xff]  }
  0x46   :  { %1196 = vmatpush3.bf16.msra.mxu0 %v1347_v15  ;;  %1260 = vmatpush3.bf16.msra.mxu1 %v1349_v17  ;;  %v70_v34 = vld [vmem:[#allocation2 + $0x38] sm:$0xff]  ;;  %v1365_v39 = vld [vmem:[#allocation7 + $0xa0] sm:$0xff]   ;;  %v1368_v43 = vld [vmem:[#allocation7 + $0xe8] sm:$0xff]  }
  0x47   :  { %1197 = vmatprep.subr.bf16.mxu0 %v1350_v19  ;;  %1261 = vmatprep.subr.bf16.mxu1 %v1352_v21  ;;  %v1361_v35 = vld [vmem:[#allocation7 + $0x98] sm:$0xff]   ;;  %v82_v40 = vpack.c.bf16 %v70_v34, %v69_v33  ;;  %v71_v44 = vld [vmem:[#allocation2 + $0x40] sm:$0xff]  ;;  %v72_v45 = vld [vmem:[#allocation2 + $0x48] sm:$0xff] }
  0x48   :  { %v1369_v46 = vld [vmem:[#allocation7 + $0xa8] sm:$0xff]   ;;  %v1370_v47 = vld [vmem:[#allocation7 + $0x70] sm:$0xff]   ;;  %v83_v51 = vpack.c.bf16 %v72_v45, %v71_v44  ;;  %v74_v53 = vld [vmem:[#allocation2 + $0x58] sm:$0xff] }
  0x49   :  { %v1371_v48 = vld [vmem:[#allocation7 + $0x30] sm:$0xff]   ;;  %v75_v55 = vld [vmem:[#allocation2 + $0x60] sm:$0xff]  ;;  %v76_v56 = vld [vmem:[#allocation2 + $0x68] sm:$0xff] }
  0x4a   :  { %1198 = vmatpush3.bf16.msra.mxu0 %v1351_v20  ;;  %1262 = vmatpush3.bf16.msra.mxu1 %v1353_v24  ;;  %v1372_v49 = vld [vmem:[#allocation7 + $0xf0] sm:$0xff]   ;;  %v85_v57 = vpack.c.bf16 %v76_v56, %v75_v55  ;;  %v78_v59 = vld [vmem:[#allocation2 + $0x78] sm:$0xff] }
  0x4b   :  { %1199 = vmatprep.subr.bf16.mxu0 %v1354_v25  ;;  %1263 = vmatprep.subr.bf16.mxu1 %v1356_v27  ;;  %v1373_v50 = vld [vmem:[#allocation7 + $0xb0] sm:$0xff]   ;;  %v1374_v61 = vld [vmem:[#allocation7 + $0x78] sm:$0xff]  }
  0x4c   :  { %1068 = vmatmul.mubr.msk.bf16.gmra.mrb[4].mxu0 %vm157_vm0, %v80_v18  ;;  %1076 = vmatmul.mubr.msk.bf16.gmra.mrb[4].mxu1 %vm157_vm0, %v80_v18  ;;  %v73_v52 = vld [vmem:[#allocation2 + $0x50] sm:$0xff]  ;;  %v1376_v62 = vld [vmem:[#allocation7 + $0xf8] sm:$0xff]  }
  0x4d   :  { %234 = vmatprep.mubr.bf16.mxu0 %v1481_v0  ;;  %347 = vmatprep.mubr.bf16.mxu1 %v1481_v0  ;;  %v84_v54 = vpack.c.bf16 %v74_v53, %v73_v52  ;;  %v77_v58 = vld [vmem:[#allocation2 + $0x70] sm:$0xff]  ;;  %v1375_v63 = vld [vmem:[#allocation7 + $0x38] sm:$0xff]  }
  0x4e   :  { %1200 = vmatpush3.bf16.msra.mxu0 %v1355_v26  ;;  %1264 = vmatpush3.bf16.msra.mxu1 %v1357_v28  ;;  %v86_v60 = vpack.c.bf16 %v78_v59, %v77_v58  ;;  %v1377_v1 = vld [vmem:[#allocation7 + $0xb8] sm:$0xff]  }
  0x4f   :  { %1201 = vmatprep.subr.bf16.mxu0 %v1358_v30  ;;  %1265 = vmatprep.subr.bf16.mxu1 %v1360_v32 }
  0x52   :  { %1202 = vmatpush3.bf16.msra.mxu0 %v1359_v31  ;;  %1266 = vmatpush3.bf16.msra.mxu1 %v1361_v35 }
  0x53   :  { %1203 = vmatprep.subr.bf16.mxu0 %v1362_v36  ;;  %1267 = vmatprep.subr.bf16.mxu1 %v1364_v38 }
  0x54   :  { %1069 = vmatmul.mubr.msk.bf16.gmra.mrb[8].mxu0 %vm157_vm0, %v81_v29  ;;  %1077 = vmatmul.mubr.msk.bf16.gmra.mrb[8].mxu1 %vm157_vm0, %v81_v29 }
  0x55   :  { %244 = vmatprep.mubr.bf16.mxu0 %v1481_v0  ;;  %357 = vmatprep.mubr.bf16.mxu1 %v1481_v0 }
  0x56   :  { %1204 = vmatpush3.bf16.msra.mxu0 %v1363_v37  ;;  %1268 = vmatpush3.bf16.msra.mxu1 %v1365_v39 }
  0x57   :  { %1205 = vmatprep.subr.bf16.mxu0 %v1366_v41  ;;  %1269 = vmatprep.subr.bf16.mxu1 %v1368_v43 }
  0x5a   :  { %1206 = vmatpush3.bf16.msra.mxu0 %v1367_v42  ;;  %1270 = vmatpush3.bf16.msra.mxu1 %v1369_v46 }
  0x5b   :  { %1207 = vmatprep.subr.bf16.mxu0 %v1370_v47  ;;  %1271 = vmatprep.subr.bf16.mxu1 %v1372_v49 }
  0x5c   :  { %1070 = vmatmul.mubr.msk.bf16.gmra.mrb[12].mxu0 %vm157_vm0, %v82_v40  ;;  %1078 = vmatmul.mubr.msk.bf16.gmra.mrb[12].mxu1 %vm157_vm0, %v82_v40 }
  0x5d   :  { %254 = vmatprep.mubr.bf16.mxu0 %v1481_v0  ;;  %367 = vmatprep.mubr.bf16.mxu1 %v1481_v0 }
  0x5e   :  { %1208 = vmatpush3.bf16.msra.mxu0 %v1371_v48  ;;  %1272 = vmatpush3.bf16.msra.mxu1 %v1373_v50 }
  0x5f   :  { %1209 = vmatprep.subr.bf16.mxu0 %v1374_v61  ;;  %1273 = vmatprep.subr.bf16.mxu1 %v1376_v62 }
  0x62   :  { %1210 = vmatpush3.bf16.msra.mxu0 %v1375_v63  ;;  %1274 = vmatpush3.bf16.msra.mxu1 %v1377_v1 }
  0x64   :  { %1071 = vmatmul.mubr.msk.bf16.gmra.mrb[16].mxu0 %vm157_vm0, %v83_v51  ;;  %1079 = vmatmul.mubr.msk.bf16.gmra.mrb[16].mxu1 %vm157_vm0, %v83_v51 }
  0x65   :  { %264 = vmatprep.mubr.bf16.mxu0 %v1481_v0  ;;  %377 = vmatprep.mubr.bf16.mxu1 %v1481_v0 }
  0x6c   :  { %1072 = vmatmul.mubr.msk.bf16.gmra.mrb[20].mxu0 %vm157_vm0, %v84_v54  ;;  %1080 = vmatmul.mubr.msk.bf16.gmra.mrb[20].mxu1 %vm157_vm0, %v84_v54 }
  0x6d   :  { %274 = vmatprep.mubr.bf16.mxu0 %v1481_v0  ;;  %387 = vmatprep.mubr.bf16.mxu1 %v1481_v0 }
  0x74   :  { %1073 = vmatmul.mubr.msk.bf16.gmra.mrb[24].mxu0 %vm157_vm0, %v85_v57  ;;  %1081 = vmatmul.mubr.msk.bf16.gmra.mrb[24].mxu1 %vm157_vm0, %v85_v57 }
  0x75   :  { %284 = vmatprep.mubr.bf16.mxu0 %v1481_v0  ;;  %397 = vmatprep.mubr.bf16.mxu1 %v1481_v0  ;;  %v95_v0 = vld [vmem:[%s1697_s2] sm:$0xf] }
  0x76   :  { %v1587_v8 = vrot.slane %v95_v0, %v99_v4  ;;  %v1589_v9 = vrot.slane %v95_v0, %v107_v5  ;;  %v1591_v10 = vrot.slane %v95_v0, %v103_v6  ;;  %v1593_v11 = vrot.slane %v95_v0, %v111_v7 }
  0x7c   :  { %1074 = vmatmul.mubr.msk.bf16.gmra.mrb[28].mxu0 %vm157_vm0, %v86_v60  ;;  %1082 = vmatmul.mubr.msk.bf16.gmra.mrb[28].mxu1 %vm157_vm0, %v86_v60 }
 0x117   :  { %v216_v12 = vpop.f32.mrb[0].mxu0  ;;  %v329_v13 = vpop.f32.mrb[0].mxu1 }
 0x118   :  { %v217_v14 = vadd.f32 %v216_v12, %v1587_v8  ;;  %v330_v15 = vadd.f32 %v329_v13, %v1589_v9  ;;  %v218_v16 = vpop.f32.mrb[1].mxu0  ;;  %v331_v17 = vpop.f32.mrb[1].mxu1 }
 0x119   :  { %v219_v18 = vadd.f32 %v218_v16, %v1591_v10  ;;  %v332_v19 = vadd.f32 %v331_v17, %v1593_v11  ;;  %v220_v20 = vpop.f32.mrb[2].mxu0  ;;  %v333_v21 = vpop.f32.mrb[2].mxu1 }
 0x11a   :  { %v410_v22 = vmax.f32 %v330_v15, 0.0  ;;  %v221_v23 = vadd.f32 %v220_v20, %v1587_v8  ;;  %v334_v24 = vadd.f32 %v333_v21, %v1589_v9  ;;  %v222_v25 = vpop.f32.mrb[3].mxu0  ;;  %v335_v26 = vpop.f32.mrb[3].mxu1  ;;  %v408_v30 = vmax.f32 %v217_v14, 0.0 }
 0x11b   :  { %v411_v27 = vmax.f32 %v332_v19, 0.0  ;;  %v223_v28 = vadd.f32 %v222_v25, %v1591_v10  ;;  %v336_v29 = vadd.f32 %v335_v26, %v1593_v11  ;;  %v409_v33 = vmax.f32 %v219_v18, 0.0 }
 0x11c   :  { %v412_v31 = vmax.f32 %v221_v23, 0.0  ;;  %v414_v32 = vmax.f32 %v334_v24, 0.0 }
 0x11d   :  { %v413_v34 = vmax.f32 %v223_v28, 0.0  ;;  %v415_v35 = vmax.f32 %v336_v29, 0.0 }
 0x11e   :  { %v472_v36 = vpack.c.bf16 %v412_v31, %v408_v30  ;;  %v474_v37 = vpack.c.bf16 %v414_v32, %v410_v22 }
 0x11f   :  { %v473_v38 = vpack.c.bf16 %v413_v34, %v409_v33  ;;  %v475_v39 = vpack.c.bf16 %v415_v35, %v411_v27  ;;  %v226_v40 = vpop.f32.mrb[4].mxu0  ;;  %v339_v41 = vpop.f32.mrb[4].mxu1 }
 0x120   :  { %v227_v42 = vadd.f32 %v226_v40, %v1587_v8  ;;  %v340_v43 = vadd.f32 %v339_v41, %v1589_v9  ;;  %v228_v44 = vpop.f32.mrb[5].mxu0  ;;  %v341_v45 = vpop.f32.mrb[5].mxu1 }
 0x121   :  { %v229_v46 = vadd.f32 %v228_v44, %v1591_v10  ;;  %v342_v47 = vadd.f32 %v341_v45, %v1593_v11  ;;  %v230_v48 = vpop.f32.mrb[6].mxu0  ;;  %v343_v49 = vpop.f32.mrb[6].mxu1  ;;  %799 = vmatprep.mubr.bf16.mxu0 %v473_v38  ;;  %896 = vmatprep.mubr.bf16.mxu1 %v475_v39 }
 0x122   :  { %v418_v50 = vmax.f32 %v340_v43, 0.0  ;;  %v231_v51 = vadd.f32 %v230_v48, %v1587_v8  ;;  %v344_v52 = vadd.f32 %v343_v49, %v1589_v9  ;;  %v232_v53 = vpop.f32.mrb[7].mxu0  ;;  %v345_v54 = vpop.f32.mrb[7].mxu1  ;;  %800 = vmatmul.mubr.bf16.vlgmr.msra.gmra.mrb[32].mxu0 %v472_v36  ;;  %897 = vmatmul.mubr.bf16.vlgmr.msra.gmra.mrb[32].mxu1 %v474_v37  ;;  %v416_v58 = vmax.f32 %v227_v42, 0.0 }
 0x123   :  { %v419_v55 = vmax.f32 %v342_v47, 0.0  ;;  %v233_v56 = vadd.f32 %v232_v53, %v1591_v10  ;;  %v346_v57 = vadd.f32 %v345_v54, %v1593_v11  ;;  %v417_v61 = vmax.f32 %v229_v46, 0.0 }
 0x124   :  { %v420_v59 = vmax.f32 %v231_v51, 0.0  ;;  %v422_v60 = vmax.f32 %v344_v52, 0.0 }
 0x125   :  { %v421_v62 = vmax.f32 %v233_v56, 0.0  ;;  %v423_v63 = vmax.f32 %v346_v57, 0.0 }
 0x126   :  { %v476_v1 = vpack.c.bf16 %v420_v59, %v416_v58  ;;  %v478_v2 = vpack.c.bf16 %v422_v60, %v418_v50 }
 0x127   :  { %v477_v3 = vpack.c.bf16 %v421_v62, %v417_v61  ;;  %v479_v4 = vpack.c.bf16 %v423_v63, %v419_v55  ;;  %v236_v5 = vpop.f32.mrb[8].mxu0  ;;  %v349_v0 = vpop.f32.mrb[8].mxu1 }
 0x128   :  { %v237_v6 = vadd.f32 %v236_v5, %v1587_v8  ;;  %v350_v7 = vadd.f32 %v349_v0, %v1589_v9  ;;  %v238_v12 = vpop.f32.mrb[9].mxu0  ;;  %v351_v13 = vpop.f32.mrb[9].mxu1 }
 0x129   :  { %v239_v14 = vadd.f32 %v238_v12, %v1591_v10  ;;  %v352_v15 = vadd.f32 %v351_v13, %v1593_v11  ;;  %v240_v16 = vpop.f32.mrb[10].mxu0  ;;  %v353_v17 = vpop.f32.mrb[10].mxu1  ;;  %807 = vmatprep.mubr.bf16.mxu0 %v477_v3  ;;  %904 = vmatprep.mubr.bf16.mxu1 %v479_v4 }
 0x12a   :  { %v426_v18 = vmax.f32 %v350_v7, 0.0  ;;  %v241_v19 = vadd.f32 %v240_v16, %v1587_v8  ;;  %v354_v20 = vadd.f32 %v353_v17, %v1589_v9  ;;  %v242_v21 = vpop.f32.mrb[11].mxu0  ;;  %v355_v22 = vpop.f32.mrb[11].mxu1  ;;  %808 = vmatmul.mubr.bf16.gmra.mrb[36].mxu0 %v476_v1  ;;  %905 = vmatmul.mubr.bf16.gmra.mrb[36].mxu1 %v478_v2  ;;  %v424_v26 = vmax.f32 %v237_v6, 0.0 }
 0x12b   :  { %v427_v23 = vmax.f32 %v352_v15, 0.0  ;;  %v243_v24 = vadd.f32 %v242_v21, %v1591_v10  ;;  %v356_v25 = vadd.f32 %v355_v22, %v1593_v11  ;;  %v425_v29 = vmax.f32 %v239_v14, 0.0 }
 0x12c   :  { %v428_v27 = vmax.f32 %v241_v19, 0.0  ;;  %v430_v28 = vmax.f32 %v354_v20, 0.0 }
 0x12d   :  { %v429_v30 = vmax.f32 %v243_v24, 0.0  ;;  %v431_v31 = vmax.f32 %v356_v25, 0.0 }
 0x12e   :  { %v480_v32 = vpack.c.bf16 %v428_v27, %v424_v26  ;;  %v482_v33 = vpack.c.bf16 %v430_v28, %v426_v18 }
 0x12f   :  { %v481_v34 = vpack.c.bf16 %v429_v30, %v425_v29  ;;  %v483_v35 = vpack.c.bf16 %v431_v31, %v427_v23  ;;  %v246_v36 = vpop.f32.mrb[12].mxu0  ;;  %v359_v37 = vpop.f32.mrb[12].mxu1 }
 0x130   :  { %v247_v38 = vadd.f32 %v246_v36, %v1587_v8  ;;  %v360_v39 = vadd.f32 %v359_v37, %v1589_v9  ;;  %v248_v40 = vpop.f32.mrb[13].mxu0  ;;  %v361_v41 = vpop.f32.mrb[13].mxu1 }
 0x131   :  { %v249_v42 = vadd.f32 %v248_v40, %v1591_v10  ;;  %v362_v43 = vadd.f32 %v361_v41, %v1593_v11  ;;  %v250_v44 = vpop.f32.mrb[14].mxu0  ;;  %v363_v45 = vpop.f32.mrb[14].mxu1  ;;  %815 = vmatprep.mubr.bf16.mxu0 %v481_v34  ;;  %912 = vmatprep.mubr.bf16.mxu1 %v483_v35 }
 0x132   :  { %v434_v46 = vmax.f32 %v360_v39, 0.0  ;;  %v251_v47 = vadd.f32 %v250_v44, %v1587_v8  ;;  %v364_v48 = vadd.f32 %v363_v45, %v1589_v9  ;;  %v252_v49 = vpop.f32.mrb[15].mxu0  ;;  %v365_v50 = vpop.f32.mrb[15].mxu1  ;;  %816 = vmatmul.mubr.bf16.gmra.mrb[40].mxu0 %v480_v32  ;;  %913 = vmatmul.mubr.bf16.gmra.mrb[40].mxu1 %v482_v33  ;;  %v432_v54 = vmax.f32 %v247_v38, 0.0 }
 0x133   :  { %v435_v51 = vmax.f32 %v362_v43, 0.0  ;;  %v253_v52 = vadd.f32 %v252_v49, %v1591_v10  ;;  %v366_v53 = vadd.f32 %v365_v50, %v1593_v11  ;;  %v433_v57 = vmax.f32 %v249_v42, 0.0 }
 0x134   :  { %v436_v55 = vmax.f32 %v251_v47, 0.0  ;;  %v438_v56 = vmax.f32 %v364_v48, 0.0 }
 0x135   :  { %v437_v58 = vmax.f32 %v253_v52, 0.0  ;;  %v439_v59 = vmax.f32 %v366_v53, 0.0 }
 0x136   :  { %v484_v60 = vpack.c.bf16 %v436_v55, %v432_v54  ;;  %v486_v61 = vpack.c.bf16 %v438_v56, %v434_v46 }
 0x137   :  { %v485_v62 = vpack.c.bf16 %v437_v58, %v433_v57  ;;  %v487_v63 = vpack.c.bf16 %v439_v59, %v435_v51  ;;  %v256_v1 = vpop.f32.mrb[16].mxu0  ;;  %v369_v2 = vpop.f32.mrb[16].mxu1 }
 0x138   :  { %v257_v3 = vadd.f32 %v256_v1, %v1587_v8  ;;  %v370_v4 = vadd.f32 %v369_v2, %v1589_v9  ;;  %v258_v5 = vpop.f32.mrb[17].mxu0  ;;  %v371_v0 = vpop.f32.mrb[17].mxu1 }
 0x139   :  { %v259_v6 = vadd.f32 %v258_v5, %v1591_v10  ;;  %v372_v7 = vadd.f32 %v371_v0, %v1593_v11  ;;  %v260_v12 = vpop.f32.mrb[18].mxu0  ;;  %v373_v13 = vpop.f32.mrb[18].mxu1  ;;  %823 = vmatprep.mubr.bf16.mxu0 %v485_v62  ;;  %920 = vmatprep.mubr.bf16.mxu1 %v487_v63 }
 0x13a   :  { %v442_v14 = vmax.f32 %v370_v4, 0.0  ;;  %v261_v15 = vadd.f32 %v260_v12, %v1587_v8  ;;  %v374_v16 = vadd.f32 %v373_v13, %v1589_v9  ;;  %v262_v17 = vpop.f32.mrb[19].mxu0  ;;  %v375_v18 = vpop.f32.mrb[19].mxu1  ;;  %824 = vmatmul.mubr.bf16.gmra.mrb[44].mxu0 %v484_v60  ;;  %921 = vmatmul.mubr.bf16.gmra.mrb[44].mxu1 %v486_v61  ;;  %v440_v22 = vmax.f32 %v257_v3, 0.0 }
 0x13b   :  { %v443_v19 = vmax.f32 %v372_v7, 0.0  ;;  %v263_v20 = vadd.f32 %v262_v17, %v1591_v10  ;;  %v376_v21 = vadd.f32 %v375_v18, %v1593_v11  ;;  %v441_v25 = vmax.f32 %v259_v6, 0.0 }
 0x13c   :  { %v444_v23 = vmax.f32 %v261_v15, 0.0  ;;  %v446_v24 = vmax.f32 %v374_v16, 0.0 }
 0x13d   :  { %v445_v26 = vmax.f32 %v263_v20, 0.0  ;;  %v447_v27 = vmax.f32 %v376_v21, 0.0 }
 0x13e   :  { %v488_v28 = vpack.c.bf16 %v444_v23, %v440_v22  ;;  %v490_v29 = vpack.c.bf16 %v446_v24, %v442_v14 }
 0x13f   :  { %v489_v30 = vpack.c.bf16 %v445_v26, %v441_v25  ;;  %v491_v31 = vpack.c.bf16 %v447_v27, %v443_v19  ;;  %v266_v32 = vpop.f32.mrb[20].mxu0  ;;  %v379_v33 = vpop.f32.mrb[20].mxu1 }
 0x140   :  { %v267_v34 = vadd.f32 %v266_v32, %v1587_v8  ;;  %v380_v35 = vadd.f32 %v379_v33, %v1589_v9  ;;  %v268_v36 = vpop.f32.mrb[21].mxu0  ;;  %v381_v37 = vpop.f32.mrb[21].mxu1 }
 0x141   :  { %v269_v38 = vadd.f32 %v268_v36, %v1591_v10  ;;  %v382_v39 = vadd.f32 %v381_v37, %v1593_v11  ;;  %v270_v40 = vpop.f32.mrb[22].mxu0  ;;  %v383_v41 = vpop.f32.mrb[22].mxu1  ;;  %831 = vmatprep.mubr.bf16.mxu0 %v489_v30  ;;  %928 = vmatprep.mubr.bf16.mxu1 %v491_v31 }
 0x142   :  { %v450_v42 = vmax.f32 %v380_v35, 0.0  ;;  %v271_v43 = vadd.f32 %v270_v40, %v1587_v8  ;;  %v384_v44 = vadd.f32 %v383_v41, %v1589_v9  ;;  %v272_v45 = vpop.f32.mrb[23].mxu0  ;;  %v385_v46 = vpop.f32.mrb[23].mxu1  ;;  %832 = vmatmul.mubr.bf16.gmra.mrb[48].mxu0 %v488_v28  ;;  %929 = vmatmul.mubr.bf16.gmra.mrb[48].mxu1 %v490_v29  ;;  %v448_v50 = vmax.f32 %v267_v34, 0.0 }
 0x143   :  { %v451_v47 = vmax.f32 %v382_v39, 0.0  ;;  %v273_v48 = vadd.f32 %v272_v45, %v1591_v10  ;;  %v386_v49 = vadd.f32 %v385_v46, %v1593_v11  ;;  %v449_v53 = vmax.f32 %v269_v38, 0.0 }
 0x144   :  { %v452_v51 = vmax.f32 %v271_v43, 0.0  ;;  %v454_v52 = vmax.f32 %v384_v44, 0.0 }
 0x145   :  { %v453_v54 = vmax.f32 %v273_v48, 0.0  ;;  %v455_v55 = vmax.f32 %v386_v49, 0.0 }
 0x146   :  { %v492_v56 = vpack.c.bf16 %v452_v51, %v448_v50  ;;  %v494_v57 = vpack.c.bf16 %v454_v52, %v450_v42 }
 0x147   :  { %v493_v58 = vpack.c.bf16 %v453_v54, %v449_v53  ;;  %v495_v59 = vpack.c.bf16 %v455_v55, %v451_v47  ;;  %v276_v60 = vpop.f32.mrb[24].mxu0  ;;  %v389_v61 = vpop.f32.mrb[24].mxu1 }
 0x148   :  { %v277_v62 = vadd.f32 %v276_v60, %v1587_v8  ;;  %v390_v63 = vadd.f32 %v389_v61, %v1589_v9  ;;  %v278_v1 = vpop.f32.mrb[25].mxu0  ;;  %v391_v2 = vpop.f32.mrb[25].mxu1 }
 0x149   :  { %v279_v3 = vadd.f32 %v278_v1, %v1591_v10  ;;  %v392_v4 = vadd.f32 %v391_v2, %v1593_v11  ;;  %v280_v5 = vpop.f32.mrb[26].mxu0  ;;  %v393_v0 = vpop.f32.mrb[26].mxu1  ;;  %839 = vmatprep.mubr.bf16.mxu0 %v493_v58  ;;  %936 = vmatprep.mubr.bf16.mxu1 %v495_v59 }
 0x14a   :  { %v458_v6 = vmax.f32 %v390_v63, 0.0  ;;  %v281_v7 = vadd.f32 %v280_v5, %v1587_v8  ;;  %v394_v12 = vadd.f32 %v393_v0, %v1589_v9  ;;  %v282_v13 = vpop.f32.mrb[27].mxu0  ;;  %v395_v14 = vpop.f32.mrb[27].mxu1  ;;  %840 = vmatmul.mubr.bf16.gmra.mrb[52].mxu0 %v492_v56  ;;  %937 = vmatmul.mubr.bf16.gmra.mrb[52].mxu1 %v494_v57  ;;  %v456_v18 = vmax.f32 %v277_v62, 0.0 }
 0x14b   :  { %v459_v15 = vmax.f32 %v392_v4, 0.0  ;;  %v283_v16 = vadd.f32 %v282_v13, %v1591_v10  ;;  %v396_v17 = vadd.f32 %v395_v14, %v1593_v11  ;;  %v457_v21 = vmax.f32 %v279_v3, 0.0 }
 0x14c   :  { %v460_v19 = vmax.f32 %v281_v7, 0.0  ;;  %v462_v20 = vmax.f32 %v394_v12, 0.0 }
 0x14d   :  { %v461_v22 = vmax.f32 %v283_v16, 0.0  ;;  %v463_v23 = vmax.f32 %v396_v17, 0.0 }
 0x14e   :  { %v496_v24 = vpack.c.bf16 %v460_v19, %v456_v18  ;;  %v498_v25 = vpack.c.bf16 %v462_v20, %v458_v6 }
 0x14f   :  { %v497_v26 = vpack.c.bf16 %v461_v22, %v457_v21  ;;  %v499_v27 = vpack.c.bf16 %v463_v23, %v459_v15  ;;  %v286_v28 = vpop.f32.mrb[28].mxu0  ;;  %v399_v29 = vpop.f32.mrb[28].mxu1 }
 0x150   :  { %v287_v30 = vadd.f32 %v286_v28, %v1587_v8  ;;  %v400_v31 = vadd.f32 %v399_v29, %v1589_v9  ;;  %v288_v32 = vpop.f32.mrb[29].mxu0  ;;  %v401_v33 = vpop.f32.mrb[29].mxu1 }
 0x151   :  { %v289_v34 = vadd.f32 %v288_v32, %v1591_v10  ;;  %v402_v35 = vadd.f32 %v401_v33, %v1593_v11  ;;  %v290_v36 = vpop.f32.mrb[30].mxu0  ;;  %v403_v37 = vpop.f32.mrb[30].mxu1  ;;  %847 = vmatprep.mubr.bf16.mxu0 %v497_v26  ;;  %944 = vmatprep.mubr.bf16.mxu1 %v499_v27 }
 0x152   :  { %v466_v38 = vmax.f32 %v400_v31, 0.0  ;;  %v291_v39 = vadd.f32 %v290_v36, %v1587_v8  ;;  %v404_v40 = vadd.f32 %v403_v37, %v1589_v9  ;;  %v292_v41 = vpop.f32.mrb[31].mxu0  ;;  %v405_v42 = vpop.f32.mrb[31].mxu1  ;;  %848 = vmatmul.mubr.bf16.gmra.mrb[56].mxu0 %v496_v24  ;;  %945 = vmatmul.mubr.bf16.gmra.mrb[56].mxu1 %v498_v25  ;;  %v464_v46 = vmax.f32 %v287_v30, 0.0 }
 0x153   :  { %v467_v43 = vmax.f32 %v402_v35, 0.0  ;;  %v293_v44 = vadd.f32 %v292_v41, %v1591_v10  ;;  %v406_v45 = vadd.f32 %v405_v42, %v1593_v11  ;;  %v465_v49 = vmax.f32 %v289_v34, 0.0  ;;  %v1662_v10 = vld [vmem:[%s1699_s4] ss:$0 sm:$0xff] }
 0x154   :  { %v468_v47 = vmax.f32 %v291_v39, 0.0  ;;  %v470_v48 = vmax.f32 %v404_v40, 0.0 }
 0x155   :  { %v469_v50 = vmax.f32 %v293_v44, 0.0  ;;  %v471_v51 = vmax.f32 %v406_v45, 0.0 }
 0x156   :  { %v500_v52 = vpack.c.bf16 %v468_v47, %v464_v46  ;;  %v502_v53 = vpack.c.bf16 %v470_v48, %v466_v38 }
 0x157   :  { %v501_v8 = vpack.c.bf16 %v469_v50, %v465_v49  ;;  %v503_v54 = vpack.c.bf16 %v471_v51, %v467_v43 }
 0x159   :  { %855 = vmatprep.mubr.bf16.mxu0 %v501_v8  ;;  %952 = vmatprep.mubr.bf16.mxu1 %v503_v54 }
 0x15a   :  { %856 = vmatmul.mubr.bf16.gmra.mrb[60].mxu0 %v500_v52  ;;  %953 = vmatmul.mubr.bf16.gmra.mrb[60].mxu1 %v502_v53 }
 0x1f5   :  { %v1211_v9 = vpop.f32.mrb[32].mxu0  ;;  %v1275_v55 = vpop.f32.mrb[32].mxu1 }
 0x1f6   :  { %v1212_v11 = vpop.f32.mrb[33].mxu0  ;;  %v1276_v56 = vpop.f32.mrb[33].mxu1 }
 0x1f7   :  { %v1213_v57 = vadd.f32 %v1212_v11, %v1211_v9  ;;  %v1277_v58 = vadd.f32 %v1276_v56, %v1275_v55  ;;  %v1214_v59 = vpop.f32.mrb[34].mxu0  ;;  %v1278_v60 = vpop.f32.mrb[34].mxu1 }
 0x1f8   :  { %v1215_v61 = vpop.f32.mrb[35].mxu0  ;;  %v1279_v62 = vpop.f32.mrb[35].mxu1 }
 0x1f9   :  { %v802_v63 = vadd.f32 %v1213_v57, %v1662_v10  ;;  %v1216_v1 = vadd.f32 %v1215_v61, %v1214_v59  ;;  %v1280_v2 = vadd.f32 %v1279_v62, %v1278_v60 }
 0x1fb   :  { %v899_v3 = vadd.f32 %v1277_v58, %v802_v63  ;;  %v805_v4 = vadd.f32 %v1216_v1, %v1662_v10 }
 0x1fd   :  { %v902_v5 = vadd.f32 %v1280_v2, %v805_v4  ;;  %v1217_v0 = vpop.f32.mrb[36].mxu0  ;;  %v1281_v6 = vpop.f32.mrb[36].mxu1 }
 0x1fe   :  { %v1218_v7 = vpop.f32.mrb[37].mxu0  ;;  %v1282_v12 = vpop.f32.mrb[37].mxu1 }
 0x1ff   :  { %v1151_v13 = vpack.c.bf16 %v902_v5, %v899_v3  ;;  %v1219_v14 = vadd.f32 %v1218_v7, %v1217_v0  ;;  %v1283_v15 = vadd.f32 %v1282_v12, %v1281_v6  ;;  %v1220_v16 = vpop.f32.mrb[38].mxu0  ;;  %v1284_v17 = vpop.f32.mrb[38].mxu1 }
 0x200   :  { %v1221_v18 = vpop.f32.mrb[39].mxu0  ;;  %v1285_v19 = vpop.f32.mrb[39].mxu1 }
 0x201   :  { %1152 = vst [vmem:[#allocation8] sm:$0xff] %v1151_v13   ;;  %v810_v20 = vadd.f32 %v1219_v14, %v1662_v10  ;;  %v1222_v21 = vadd.f32 %v1221_v18, %v1220_v16  ;;  %v1286_v22 = vadd.f32 %v1285_v19, %v1284_v17 }
 0x203   :  { %v907_v23 = vadd.f32 %v1283_v15, %v810_v20  ;;  %v813_v24 = vadd.f32 %v1222_v21, %v1662_v10 }
 0x205   :  { %v910_v25 = vadd.f32 %v1286_v22, %v813_v24  ;;  %v1223_v26 = vpop.f32.mrb[40].mxu0  ;;  %v1287_v27 = vpop.f32.mrb[40].mxu1 }
 0x206   :  { %v1224_v28 = vpop.f32.mrb[41].mxu0  ;;  %v1288_v29 = vpop.f32.mrb[41].mxu1 }
 0x207   :  { %v1156_v30 = vpack.c.bf16 %v910_v25, %v907_v23  ;;  %v1225_v31 = vadd.f32 %v1224_v28, %v1223_v26  ;;  %v1289_v32 = vadd.f32 %v1288_v29, %v1287_v27  ;;  %v1226_v33 = vpop.f32.mrb[42].mxu0  ;;  %v1290_v34 = vpop.f32.mrb[42].mxu1 }
 0x208   :  { %v1227_v35 = vpop.f32.mrb[43].mxu0  ;;  %v1291_v36 = vpop.f32.mrb[43].mxu1 }
 0x209   :  { %1188 = vst [vmem:[#allocation8 + $0x8] sm:$0xff] %v1156_v30   ;;  %v818_v37 = vadd.f32 %v1225_v31, %v1662_v10  ;;  %v1228_v38 = vadd.f32 %v1227_v35, %v1226_v33  ;;  %v1292_v39 = vadd.f32 %v1291_v36, %v1290_v34 }
 0x20b   :  { %v915_v40 = vadd.f32 %v1289_v32, %v818_v37  ;;  %v821_v41 = vadd.f32 %v1228_v38, %v1662_v10 }
 0x20d   :  { %v918_v42 = vadd.f32 %v1292_v39, %v821_v41  ;;  %v1229_v43 = vpop.f32.mrb[44].mxu0  ;;  %v1293_v44 = vpop.f32.mrb[44].mxu1 }
 0x20e   :  { %v1230_v45 = vpop.f32.mrb[45].mxu0  ;;  %v1294_v46 = vpop.f32.mrb[45].mxu1 }
 0x20f   :  { %v1161_v47 = vpack.c.bf16 %v918_v42, %v915_v40  ;;  %v1231_v48 = vadd.f32 %v1230_v45, %v1229_v43  ;;  %v1295_v49 = vadd.f32 %v1294_v46, %v1293_v44  ;;  %v1232_v50 = vpop.f32.mrb[46].mxu0  ;;  %v1296_v51 = vpop.f32.mrb[46].mxu1 }
 0x210   :  { %v1233_v52 = vpop.f32.mrb[47].mxu0  ;;  %v1297_v53 = vpop.f32.mrb[47].mxu1 }
 0x211   :  { %1189 = vst [vmem:[#allocation8 + $0x10] sm:$0xff] %v1161_v47   ;;  %v826_v8 = vadd.f32 %v1231_v48, %v1662_v10  ;;  %v1234_v54 = vadd.f32 %v1233_v52, %v1232_v50  ;;  %v1298_v9 = vadd.f32 %v1297_v53, %v1296_v51 }
 0x213   :  { %v923_v55 = vadd.f32 %v1295_v49, %v826_v8  ;;  %v829_v11 = vadd.f32 %v1234_v54, %v1662_v10 }
 0x215   :  { %v926_v56 = vadd.f32 %v1298_v9, %v829_v11  ;;  %v1235_v57 = vpop.f32.mrb[48].mxu0  ;;  %v1299_v58 = vpop.f32.mrb[48].mxu1 }
 0x216   :  { %v1236_v59 = vpop.f32.mrb[49].mxu0  ;;  %v1300_v60 = vpop.f32.mrb[49].mxu1 }
 0x217   :  { %v1166_v61 = vpack.c.bf16 %v926_v56, %v923_v55  ;;  %v1237_v62 = vadd.f32 %v1236_v59, %v1235_v57  ;;  %v1301_v63 = vadd.f32 %v1300_v60, %v1299_v58  ;;  %v1238_v1 = vpop.f32.mrb[50].mxu0  ;;  %v1302_v2 = vpop.f32.mrb[50].mxu1 }
 0x218   :  { %v1239_v3 = vpop.f32.mrb[51].mxu0  ;;  %v1303_v4 = vpop.f32.mrb[51].mxu1 }
 0x219   :  { %1190 = vst [vmem:[#allocation8 + $0x18] sm:$0xff] %v1166_v61   ;;  %v834_v5 = vadd.f32 %v1237_v62, %v1662_v10  ;;  %v1240_v0 = vadd.f32 %v1239_v3, %v1238_v1  ;;  %v1304_v6 = vadd.f32 %v1303_v4, %v1302_v2 }
 0x21b   :  { %v931_v7 = vadd.f32 %v1301_v63, %v834_v5  ;;  %v837_v12 = vadd.f32 %v1240_v0, %v1662_v10 }
 0x21d   :  { %v934_v13 = vadd.f32 %v1304_v6, %v837_v12  ;;  %v1241_v14 = vpop.f32.mrb[52].mxu0  ;;  %v1305_v15 = vpop.f32.mrb[52].mxu1 }
 0x21e   :  { %v1242_v16 = vpop.f32.mrb[53].mxu0  ;;  %v1306_v17 = vpop.f32.mrb[53].mxu1 }
 0x21f   :  { %v1171_v18 = vpack.c.bf16 %v934_v13, %v931_v7  ;;  %v1243_v19 = vadd.f32 %v1242_v16, %v1241_v14  ;;  %v1307_v20 = vadd.f32 %v1306_v17, %v1305_v15  ;;  %v1244_v21 = vpop.f32.mrb[54].mxu0  ;;  %v1308_v22 = vpop.f32.mrb[54].mxu1 }
 0x220   :  { %v1245_v23 = vpop.f32.mrb[55].mxu0  ;;  %v1309_v24 = vpop.f32.mrb[55].mxu1 }
 0x221   :  { %1191 = vst [vmem:[#allocation8 + $0x20] sm:$0xff] %v1171_v18   ;;  %v842_v25 = vadd.f32 %v1243_v19, %v1662_v10  ;;  %v1246_v26 = vadd.f32 %v1245_v23, %v1244_v21  ;;  %v1310_v27 = vadd.f32 %v1309_v24, %v1308_v22 }
 0x223   :  { %v939_v28 = vadd.f32 %v1307_v20, %v842_v25  ;;  %v845_v29 = vadd.f32 %v1246_v26, %v1662_v10 }
 0x225   :  { %v942_v30 = vadd.f32 %v1310_v27, %v845_v29  ;;  %v1247_v31 = vpop.f32.mrb[56].mxu0  ;;  %v1311_v32 = vpop.f32.mrb[56].mxu1 }
 0x226   :  { %v1248_v33 = vpop.f32.mrb[57].mxu0  ;;  %v1312_v34 = vpop.f32.mrb[57].mxu1 }
 0x227   :  { %v1176_v35 = vpack.c.bf16 %v942_v30, %v939_v28  ;;  %v1249_v36 = vadd.f32 %v1248_v33, %v1247_v31  ;;  %v1313_v37 = vadd.f32 %v1312_v34, %v1311_v32  ;;  %v1250_v38 = vpop.f32.mrb[58].mxu0  ;;  %v1314_v39 = vpop.f32.mrb[58].mxu1 }
 0x228   :  { %v1251_v40 = vpop.f32.mrb[59].mxu0  ;;  %v1315_v41 = vpop.f32.mrb[59].mxu1 }
 0x229   :  { %1192 = vst [vmem:[#allocation8 + $0x28] sm:$0xff] %v1176_v35   ;;  %v850_v42 = vadd.f32 %v1249_v36, %v1662_v10  ;;  %v1252_v43 = vadd.f32 %v1251_v40, %v1250_v38  ;;  %v1316_v44 = vadd.f32 %v1315_v41, %v1314_v39 }
 0x22b   :  { %v947_v45 = vadd.f32 %v1313_v37, %v850_v42  ;;  %v853_v46 = vadd.f32 %v1252_v43, %v1662_v10 }
 0x22d   :  { %v950_v47 = vadd.f32 %v1316_v44, %v853_v46  ;;  %v1253_v48 = vpop.f32.mrb[60].mxu0  ;;  %v1317_v49 = vpop.f32.mrb[60].mxu1 }
 0x22e   :  { %v1254_v50 = vpop.f32.mrb[61].mxu0  ;;  %v1318_v51 = vpop.f32.mrb[61].mxu1 }
 0x22f   :  { %v1181_v52 = vpack.c.bf16 %v950_v47, %v947_v45  ;;  %v1255_v53 = vadd.f32 %v1254_v50, %v1253_v48  ;;  %v1319_v8 = vadd.f32 %v1318_v51, %v1317_v49  ;;  %v1256_v54 = vpop.f32.mrb[62].mxu0  ;;  %v1320_v9 = vpop.f32.mrb[62].mxu1 }
 0x230   :  { %v1257_v55 = vpop.f32.mrb[63].mxu0  ;;  %v1321_v11 = vpop.f32.mrb[63].mxu1 }
 0x231   :  { %1193 = vst [vmem:[#allocation8 + $0x30] sm:$0xff] %v1181_v52   ;;  %v858_v56 = vadd.f32 %v1255_v53, %v1662_v10  ;;  %v1258_v57 = vadd.f32 %v1257_v55, %v1256_v54  ;;  %v1322_v58 = vadd.f32 %v1321_v11, %v1320_v9 }
 0x233   :  { %v955_v59 = vadd.f32 %v1319_v8, %v858_v56  ;;  %v861_v60 = vadd.f32 %v1258_v57, %v1662_v10 }
 0x235   :  { %v958_v61 = vadd.f32 %v1322_v58, %v861_v60 }
 0x237   :  { %v1186_v62 = vpack.c.bf16 %v958_v61, %v955_v59 }
 0x239   :  { %1194 = vst [vmem:[#allocation8 + $0x38] sm:$0xff] %v1186_v62  }
 0x23a   :  { %1045 = vsyncadd [#allocation4], 960  ;;  %s1482_s4 = smov [#allocation8]  }
 0x23b   :  { %s1046_s11 = sshll.u32 %s1482_s4, 4  ;;  %s1047_s11 = int_to_ptr.vmem [resolvable:$true] %s1046_s11 }
 0x23c   :  { %s1444_s12 = scalar_lea.vmem %s1047_s11, 64  ;;  %s1448_s13 = scalar_lea.vmem %s1047_s11, 1024 }
 0x23d   :  { %p1445_p10 = scmp.ne.s32.totalorder %s1047_s11, %s1444_s12  ;;  %p1449_p11 = scmp.lt.s32.totalorder %s1047_s11, %s1047_s11 }
 0x23e   :  { %p1450_p12 = scmp.lt.s32.totalorder %s1448_s13, %s1444_s12 }
 0x240   :  { %p1451_p13 = por %p1450_p12, %p1449_p11 }
 0x242   :  { %p1452_p0 = pnand %p1451_p13, %p1445_p10 }
 0x244   :  { %1455 = shalt.err (!%p1452_p0)
}
 0x245   :  { %s1456_s16 = scalar_lea.hbm %s1700_s5, 64 }
 0x246   :  { %p1457_p1 = scmp.ne.s32.totalorder %s1700_s5, %s1456_s16  ;;  %p1460_p2 = scmp.lt.u32.totalorder %s1456_s16, %s1700_s5 }
 0x248   :  { %p1462_p3 = pnand %p1460_p2, %p1457_p1 }
 0x24a   :  { %1465 = shalt.err (!%p1462_p3)
}
 0x24b   :  { %1052 = dma.vmem_to_hbm [thread:$0]  %s1047_s11, 64, %s1700_s5, [#allocation4], %s1479_s0, %s1479_s0, %s1480_s6  }
 0x24c   :  { %1470 = dma.done.wait [#allocation4], 1024  }
 0x24d   :  { %1471 = vsyncadd [#allocation4], 4294966272 }
 0x24e   :  { %1056 = vsyncpa [#allocation3], 1 }
 0x24f   :  { %1057 = vsyncpa [#allocation6], 1 }
 0x250   :  { %1058 = vsyncpa [#allocation4], 1 }

</bundles_post_ra>
